<compile_context>
chip_gen: v6e
topology: v6e:2x2x1
jax: 0.10.0
libtpu: 0.0.40
codegen_flags: <defaults>
</compile_context>

<pallas_src>
import functools
import numpy as np
import jax
import jax.numpy as jnp
from jax import lax
from jax.experimental import pallas as pl
from jax.experimental.pallas import tpu as pltpu

EPS = 1e-5


# ----------------------------------------------------------------------------
# Pallas kernels
# ----------------------------------------------------------------------------
def _matmul_stats_kernel(a_ref, b_ref, y_ref, s_ref, q_ref):
    # One bf16 row-tile of A  x  full bf16 B  ->  f32 tile of Y, plus per-tile
    # partial per-column sum / sum-of-squares (fused BN statistics).  The (1, C)
    # partials are broadcast to an (8, C) block so the stats outputs never need a
    # sub-(8,128) block shape; the host divides the reduced total by 8.
    y = jnp.dot(a_ref[...], b_ref[...], preferred_element_type=jnp.float32)
    y_ref[...] = y
    s = jnp.sum(y, axis=0, keepdims=True)        # (1, C) f32
    q = jnp.sum(y * y, axis=0, keepdims=True)    # (1, C) f32
    s_ref[...] = jnp.broadcast_to(s, s_ref.shape)
    q_ref[...] = jnp.broadcast_to(q, q_ref.shape)


def _bn_relu_kernel(y_ref, scale_ref, bias_ref, o_ref):
    o_ref[...] = jnp.maximum(y_ref[...] * scale_ref[...] + bias_ref[...], 0.0)


def _bn_add_relu_kernel(y_ref, scale_ref, bias_ref, res_ref, o_ref):
    o_ref[...] = jnp.maximum(
        y_ref[...] * scale_ref[...] + bias_ref[...] + res_ref[...], 0.0)


# ----------------------------------------------------------------------------
# Pallas wrappers
# ----------------------------------------------------------------------------
def _pick_tile(m, cap=256):
    """Largest power-of-two tile <= cap dividing m with >= 2 grid steps, so the
    'parallel' row axis can actually be sharded across both v7x TensorCores."""
    t = min(cap, m)
    while t >= 8:
        if m % t == 0 and m // t >= 2:
            return t
        t //= 2
    return m


def pallas_matmul_stats(a, b):
    """(M,K)bf16 @ (K,N)bf16 -> (M,N)f32 plus per-column sum / sum-of-squares."""
    m, k = a.shape
    _, n = b.shape
    tm = _pick_tile(m)
    grid_m = m // tm
    y, s, q = pl.pallas_call(
        _matmul_stats_kernel,
        out_shape=(jax.ShapeDtypeStruct((m, n), jnp.float32),
                   jax.ShapeDtypeStruct((grid_m * 8, n), jnp.float32),
                   jax.ShapeDtypeStruct((grid_m * 8, n), jnp.float32)),
        grid=(grid_m,),
        in_specs=[pl.BlockSpec((tm, k), lambda i: (i, 0)),
                  pl.BlockSpec((k, n), lambda i: (0, 0))],
        out_specs=(pl.BlockSpec((tm, n), lambda i: (i, 0)),
                   pl.BlockSpec((8, n), lambda i: (i, 0)),
                   pl.BlockSpec((8, n), lambda i: (i, 0))),
        compiler_params=pltpu.CompilerParams(dimension_semantics=("parallel",)),
    )(a, b)
    # each tile wrote 8 identical partial rows -> divide the reduction by 8
    return y, jnp.sum(s, axis=0) / 8.0, jnp.sum(q, axis=0) / 8.0


def pallas_bn_relu(y, scale_row, bias_row):
    m, c = y.shape
    tm = _pick_tile(m)
    return pl.pallas_call(
        _bn_relu_kernel,
        out_shape=jax.ShapeDtypeStruct((m, c), jnp.float32),
        grid=(m // tm,),
        in_specs=[pl.BlockSpec((tm, c), lambda i: (i, 0)),
                  pl.BlockSpec((1, c), lambda i: (0, 0)),
                  pl.BlockSpec((1, c), lambda i: (0, 0))],
        out_specs=pl.BlockSpec((tm, c), lambda i: (i, 0)),
        compiler_params=pltpu.CompilerParams(dimension_semantics=("parallel",)),
    )(y, scale_row, bias_row)


def pallas_bn_add_relu(y, scale_row, bias_row, res):
    m, c = y.shape
    tm = _pick_tile(m)
    return pl.pallas_call(
        _bn_add_relu_kernel,
        out_shape=jax.ShapeDtypeStruct((m, c), jnp.float32),
        grid=(m // tm,),
        in_specs=[pl.BlockSpec((tm, c), lambda i: (i, 0)),
                  pl.BlockSpec((1, c), lambda i: (0, 0)),
                  pl.BlockSpec((1, c), lambda i: (0, 0)),
                  pl.BlockSpec((tm, c), lambda i: (i, 0))],
        out_specs=pl.BlockSpec((tm, c), lambda i: (i, 0)),
        compiler_params=pltpu.CompilerParams(dimension_semantics=("parallel",)),
    )(y, scale_row, bias_row, res)


# ----------------------------------------------------------------------------
# JAX-side glue: phase-folded weights, im2col, lane-dense views
# ----------------------------------------------------------------------------
# TODO(synk): fuse the im2col window extraction into the matmul kernel (in-kernel
# shifted-window slices / tap loop) to drop the materialized patch matrix; at these
# shapes the patch matrices are <= 288 KB, so they stay on the JAX side for robustness.
def _im2col(xp, kh, kw, oh, ow):
    cols = []
    for i in range(kh):
        for j in range(kw):
            cols.append(xp[:, i:i + oh, j:j + ow, :])
    return jnp.concatenate(cols, axis=-1)        # (N, OH, OW, kh*kw*C), tap-major


# (output parity phase, 3x3-window offset) -> ConvTranspose kernel tap (k=4,s=2,p=1)
_KH_OF = {(0, 0): 3, (0, 1): 1, (1, 1): 2, (1, 2): 0}


def _ct_phase_weight(w_ct):
    """ConvTranspose2d(4,2,1) weight (Cin,Cout,4,4) -> weight (9*Cin, 4*Cout) of an
    equivalent stride-1 3x3 conv on the 1-padded input; the 4*Cout columns are the
    4 sub-pixel phases (py,px) of the 2x-upsampled output (phase-major, cout-minor)."""
    cin, cout = w_ct.shape[0], w_ct.shape[1]
    wm = jnp.zeros((3, 3, cin, 4, cout), w_ct.dtype)
    for (py, dy), kh in _KH_OF.items():
        for (px, dx), kw in _KH_OF.items():
            wm = wm.at[dy, dx, :, py * 2 + px, :].set(w_ct[:, :, kh, kw])
    return wm.reshape(9 * cin, 4 * cout)


def _conv_weight_to_mat(w):
    # PyTorch Conv2d weight (Cout, Cin, kh, kw) -> (kh*kw*Cin, Cout), tap-major.
    return jnp.transpose(w, (2, 3, 1, 0)).reshape(-1, w.shape[0])


def _lane_dense_view(y2d):
    """Reshape (M, C) -> (M*C/128, 128) when the column pattern tiles into 128 lanes
    (row-major, free); returns (view, repeat factor for per-column scale/bias)."""
    m, c = y2d.shape
    if 128 % c == 0 and (m * c) % 128 == 0:
        return y2d.reshape(m * c // 128, 128), 128 // c
    return y2d, 1


def forward(x_nchw, p, *, use_pallas=True):
    if use_pallas:
        matmul_stats = pallas_matmul_stats
        bn_relu = pallas_bn_relu
        bn_add_relu = pallas_bn_add_relu
    else:  # pure-jnp path with identical math (validates the Pallas kernels)
        def matmul_stats(a, b):
            y = jnp.dot(a, b, preferred_element_type=jnp.float32)
            return y, jnp.sum(y, axis=0), jnp.sum(y * y, axis=0)
        bn_relu = lambda y, s, b: jnp.maximum(y * s + b, 0.0)
        bn_add_relu = lambda y, s, b, r: jnp.maximum(y * s + b + r, 0.0)

    x = jnp.transpose(x_nchw, (0, 2, 3, 1)).astype(jnp.float32)     # NCHW -> NHWC
    n, h, w, cin = x.shape
    cout = p["w_ct_main"].shape[1]
    oh, ow = 2 * h, 2 * w
    m1, m2 = n * h * w, n * oh * ow

    # --- fused ConvTranspose (main + shortcut) as ONE phase-folded 3x3 conv ---
    xp = jnp.pad(x, ((0, 0), (1, 1), (1, 1), (0, 0))).astype(jnp.bfloat16)
    a1 = _im2col(xp, 3, 3, h, w).reshape(m1, 9 * cin)
    b1 = jnp.concatenate([_ct_phase_weight(p["w_ct_main"]),
                          _ct_phase_weight(p["w_ct_short"])],
                         axis=1).astype(jnp.bfloat16)               # (9*cin, 8*cout)
    y1, s1, q1 = matmul_stats(a1, b1)                               # (m1, 8*cout) f32

    # --- BN1 statistics (main branch, folded across the 4 phases) -------------
    # NOTE: E[x^2]-E[x]^2 (clamped) matches the reference here; a two-pass/Welford
    # accumulation would be safer for large-mean activations.
    sum1 = s1[: 4 * cout].reshape(4, cout).sum(0)
    sq1 = q1[: 4 * cout].reshape(4, cout).sum(0)
    mean1 = sum1 / m2
    var1 = jnp.maximum(sq1 / m2 - mean1 * mean1, 0.0)
    scale1 = p["gamma1"] * lax.rsqrt(var1 + EPS)
    bias1 = p["beta1"] - mean1 * scale1

    # --- BN1 + ReLU on the main branch, lane-dense -----------------------------
    y1_main = y1[:, : 4 * cout]                     # cols = (phase, cout)
    y1m_flat, rep1 = _lane_dense_view(y1_main)
    scale1_cols = jnp.tile(jnp.tile(scale1, 4), rep1)[None, :]
    bias1_cols = jnp.tile(jnp.tile(bias1, 4), rep1)[None, :]
    h1 = bn_relu(y1m_flat, scale1_cols, bias1_cols).reshape(m1, 4 * cout)

    # --- pixel shuffle (pure layout) -------------------------------------------
    def _shuffle(z):                                # (m1, 4*cout) -> (n, 2h, 2w, cout)
        z = z.reshape(n, h, w, 2, 2, cout)
        return jnp.transpose(z, (0, 1, 3, 2, 4, 5)).reshape(n, oh, ow, cout)

    h1_up = _shuffle(h1)
    shortcut = _shuffle(y1[:, 4 * cout:])           # stays f32, no BN

    # --- 3x3 conv (pad 1) with fused BN2 statistics -----------------------------
    hp = jnp.pad(h1_up, ((0, 0), (1, 1), (1, 1), (0, 0))).astype(jnp.bfloat16)
    a2 = _im2col(hp, 3, 3, oh, ow).reshape(m2, 9 * cout)
    b2 = _conv_weight_to_mat(p["w_conv2"]).astype(jnp.bfloat16)
    y2, s2, q2 = matmul_stats(a2, b2)                               # (m2, cout) f32

    mean2 = s2 / m2
    var2 = jnp.maximum(q2 / m2 - mean2 * mean2, 0.0)
    scale2 = p["gamma2"] * lax.rsqrt(var2 + EPS)
    bias2 = p["beta2"] - mean2 * scale2

    # --- BN2 + residual add + ReLU, lane-dense ----------------------------------
    y2_flat, rep2 = _lane_dense_view(y2)
    res_flat = shortcut.reshape(y2_flat.shape)
    out_flat = bn_add_relu(y2_flat,
                           jnp.tile(scale2, rep2)[None, :],
                           jnp.tile(bias2, rep2)[None, :],
                           res_flat)
    out = out_flat.reshape(n, oh, ow, cout)
    return jnp.transpose(out, (0, 3, 1, 2))                         # NHWC -> NCHW


# ----------------------------------------------------------------------------
# Independent f32 reference with PyTorch semantics (lax convolutions)
# ----------------------------------------------------------------------------
def forward_torch_ref(x_nchw, p):
    x = x_nchw.astype(jnp.float32)

    def conv_t(z, w_ct):   # ConvTranspose2d(k=4, s=2, p=1, bias=False)
        w = jnp.transpose(jnp.flip(w_ct, (2, 3)), (1, 0, 2, 3))     # (Cout,Cin,4,4)
        return lax.conv_general_dilated(
            z, w, window_strides=(1, 1), padding=((2, 2), (2, 2)),
            lhs_dilation=(2, 2), dimension_numbers=("NCHW", "OIHW", "NCHW"))

    def conv3(z, w):       # Conv2d(k=3, s=1, p=1, bias=False)
        return lax.conv_general_dilated(
            z, w, window_strides=(1, 1), padding=((1, 1), (1, 1)),
            dimension_numbers=("NCHW", "OIHW", "NCHW"))

    def bn(z, gamma, beta):
        mean = jnp.mean(z, axis=(0, 2, 3), keepdims=True)
        var = jnp.mean((z - mean) ** 2, axis=(0, 2, 3), keepdims=True)
        return ((z - mean) * lax.rsqrt(var + EPS) * gamma[None, :, None, None]
                + beta[None, :, None, None])

    y = conv_t(x, p["w_ct_main"])
    y = jnp.maximum(bn(y, p["gamma1"], p["beta1"]), 0.0)
    y = conv3(y, p["w_conv2"])
    y = bn(y, p["gamma2"], p["beta2"])
    return jnp.maximum(y + conv_t(x, p["w_ct_short"]), 0.0)


# ----------------------------------------------------------------------------
# Deterministic parameter init + demo run
# ----------------------------------------------------------------------------
def init_params(key, cin, cout):
    k = jax.random.split(key, 7)
    return {
        "w_ct_main": jax.random.normal(k[0], (cin, cout, 4, 4), jnp.float32)
        / np.sqrt(cin * 16),
        "w_ct_short": jax.random.normal(k[1], (cin, cout, 4, 4), jnp.float32)
        / np.sqrt(cin * 16),
        "w_conv2": jax.random.normal(k[2], (cout, cout, 3, 3), jnp.float32)
        / np.sqrt(cout * 9),
        "gamma1": 1.0 + 0.1 * jax.random.normal(k[3], (cout,), jnp.float32),
        "beta1": 0.1 * jax.random.normal(k[4], (cout,), jnp.float32),
        "gamma2": 1.0 + 0.1 * jax.random.normal(k[5], (cout,), jnp.float32),
        "beta2": 0.1 * jax.random.normal(k[6], (cout,), jnp.float32),
    }


if __name__ == "__main__":
    key = jax.random.PRNGKey(0)
    k_params, k_x = jax.random.split(key)

    N, CIN, COUT, H, W = 2, 4, 8, 16, 16
    params = init_params(k_params, CIN, COUT)
    x = jax.random.normal(k_x, (N, CIN, H, W), jnp.float32)     # NCHW, as in PyTorch

    fwd_pallas = jax.jit(functools.partial(forward, use_pallas=True))
    fwd_jnp = jax.jit(functools.partial(forward, use_pallas=False))
    fwd_torch = jax.jit(forward_torch_ref)

    out = jax.block_until_ready(fwd_pallas(x, params))
    ref_jnp = jax.block_until_ready(fwd_jnp(x, params))         # same math, no Pallas
    ref_t = jax.block_until_ready(fwd_torch(x, params))         # f32 PyTorch semantics

    assert out.shape == (N, COUT, 2 * H, 2 * W), out.shape
    err_kernel = float(jnp.max(jnp.abs(out - ref_jnp)))
    err_e2e = float(jnp.max(jnp.abs(out - ref_t)))
    assert err_kernel < 2e-2, f"Pallas vs same-math jnp mismatch: {err_kernel}"
    assert err_e2e < 6e-2, f"Pallas vs f32 PyTorch-semantics mismatch: {err_e2e}"

    print("KERNEL_OK")
</pallas_src>

<mosaic_0001>
module attributes {stable_mosaic.version = 11 : i64} {
  func.func @_matmul_stats_kernel(%arg0: i32, %arg1: memref<256x36xbf16, #tpu.memory_space<vmem>>, %arg2: memref<36x64xbf16, #tpu.memory_space<vmem>>, %arg3: memref<256x64xf32, #tpu.memory_space<vmem>>, %arg4: memref<8x64xf32, #tpu.memory_space<vmem>>, %arg5: memref<8x64xf32, #tpu.memory_space<vmem>>) attributes {dimension_semantics = [#tpu.dimension_semantics<parallel>], iteration_bounds = array<i64: 2>, scalar_prefetch = 0 : i64, scratch_operands = 0 : i64, tpu.core_type = #tpu.core_type<tc>, window_params = [{transform_indices = @transform_0, window_bounds = array<i64: 256, 36>}, {pipeline_mode = #tpu.pipeline_mode<synchronous>, transform_indices = @transform_1, window_bounds = array<i64: 36, 64>}, {transform_indices = @transform_2, window_bounds = array<i64: 256, 64>}, {transform_indices = @transform_3, window_bounds = array<i64: 8, 64>}, {transform_indices = @transform_4, window_bounds = array<i64: 8, 64>}]} {
    %c0 = arith.constant 0 : index
    %c0_0 = arith.constant 0 : index
    %0 = vector.load %arg1[%c0, %c0_0] : memref<256x36xbf16, #tpu.memory_space<vmem>>, vector<256x36xbf16>
    %c0_1 = arith.constant 0 : index
    %c0_2 = arith.constant 0 : index
    %1 = vector.load %arg2[%c0_1, %c0_2] : memref<36x64xbf16, #tpu.memory_space<vmem>>, vector<36x64xbf16>
    %cst = arith.constant dense<0.000000e+00> : vector<256x64xf32>
    %2 = tpu.matmul %0, %1, %cst {dimension_numbers = #tpu.dot_dimension_numbers<[1], [0], [0], [1], [0, 0, 1, 1], [], []>} : vector<256x36xbf16>, vector<36x64xbf16>, vector<256x64xf32> -> vector<256x64xf32>
    %c0_3 = arith.constant 0 : index
    %c0_4 = arith.constant 0 : index
    %3 = vector.load %arg3[%c0_3, %c0_4] : memref<256x64xf32, #tpu.memory_space<vmem>>, vector<256x64xf32>
    tpu.vector_store %arg3[%c0_3, %c0_4], %2 {strides = array<i32>} : memref<256x64xf32, #tpu.memory_space<vmem>>, vector<256x64xf32>,
    %cst_5 = arith.constant dense<0.000000e+00> : vector<64xf32>
    %4 = vector.multi_reduction <add>, %2, %cst_5 [0] : vector<256x64xf32> to vector<64xf32>
    %5 = vector.shape_cast %4 : vector<64xf32> to vector<1x64xf32>
    %6 = arith.mulf %2, %2 : vector<256x64xf32>
    %cst_6 = arith.constant dense<0.000000e+00> : vector<64xf32>
    %7 = vector.multi_reduction <add>, %6, %cst_6 [0] : vector<256x64xf32> to vector<64xf32>
    %8 = vector.shape_cast %7 : vector<64xf32> to vector<1x64xf32>
    %9 = vector.shape_cast %5 : vector<1x64xf32> to vector<1x64xf32>
    %10 = vector.broadcast %9 : vector<1x64xf32> to vector<8x64xf32>
    %c0_7 = arith.constant 0 : index
    %c0_8 = arith.constant 0 : index
    %11 = vector.load %arg4[%c0_7, %c0_8] : memref<8x64xf32, #tpu.memory_space<vmem>>, vector<8x64xf32>
    tpu.vector_store %arg4[%c0_7, %c0_8], %10 {strides = array<i32>} : memref<8x64xf32, #tpu.memory_space<vmem>>, vector<8x64xf32>,
    %12 = vector.shape_cast %8 : vector<1x64xf32> to vector<1x64xf32>
    %13 = vector.broadcast %12 : vector<1x64xf32> to vector<8x64xf32>
    %c0_9 = arith.constant 0 : index
    %c0_10 = arith.constant 0 : index
    %14 = vector.load %arg5[%c0_9, %c0_10] : memref<8x64xf32, #tpu.memory_space<vmem>>, vector<8x64xf32>
    tpu.vector_store %arg5[%c0_9, %c0_10], %13 {strides = array<i32>} : memref<8x64xf32, #tpu.memory_space<vmem>>, vector<8x64xf32>,
    return
  }
  func.func @transform_0(%arg0: i32) -> (i32, i32) {
    %c0_i32 = arith.constant 0 : i32
    %c0_i32_0 = arith.constant 0 : i32
    return %arg0, %c0_i32 : i32, i32
  }
  func.func @transform_1(%arg0: i32) -> (i32, i32) {
    %c0_i32 = arith.constant 0 : i32
    %c0_i32_0 = arith.constant 0 : i32
    %c0_i32_1 = arith.constant 0 : i32
    return %c0_i32, %c0_i32_0 : i32, i32
  }
  func.func @transform_2(%arg0: i32) -> (i32, i32) {
    %c0_i32 = arith.constant 0 : i32
    %c0_i32_0 = arith.constant 0 : i32
    return %arg0, %c0_i32 : i32, i32
  }
  func.func @transform_3(%arg0: i32) -> (i32, i32) {
    %c0_i32 = arith.constant 0 : i32
    %c0_i32_0 = arith.constant 0 : i32
    return %arg0, %c0_i32 : i32, i32
  }
  func.func @transform_4(%arg0: i32) -> (i32, i32) {
    %c0_i32 = arith.constant 0 : i32
    %c0_i32_0 = arith.constant 0 : i32
    return %arg0, %c0_i32 : i32, i32
  }
}

module attributes {stable_mosaic.version = 11 : i64} {
  func.func @_bn_relu_kernel(%arg0: i32, %arg1: memref<64x128xf32, #tpu.memory_space<vmem>>, %arg2: memref<1x128xf32, #tpu.memory_space<vmem>>, %arg3: memref<1x128xf32, #tpu.memory_space<vmem>>, %arg4: memref<64x128xf32, #tpu.memory_space<vmem>>) attributes {dimension_semantics = [#tpu.dimension_semantics<parallel>], iteration_bounds = array<i64: 2>, scalar_prefetch = 0 : i64, scratch_operands = 0 : i64, tpu.core_type = #tpu.core_type<tc>, window_params = [{transform_indices = @transform_0, window_bounds = array<i64: 64, 128>}, {pipeline_mode = #tpu.pipeline_mode<synchronous>, transform_indices = @transform_1, window_bounds = array<i64: 1, 128>}, {pipeline_mode = #tpu.pipeline_mode<synchronous>, transform_indices = @transform_2, window_bounds = array<i64: 1, 128>}, {transform_indices = @transform_3, window_bounds = array<i64: 64, 128>}]} {
    %c0 = arith.constant 0 : index
    %c0_0 = arith.constant 0 : index
    %0 = vector.load %arg1[%c0, %c0_0] : memref<64x128xf32, #tpu.memory_space<vmem>>, vector<64x128xf32>
    %c0_1 = arith.constant 0 : index
    %c0_2 = arith.constant 0 : index
    %1 = vector.load %arg2[%c0_1, %c0_2] : memref<1x128xf32, #tpu.memory_space<vmem>>, vector<1x128xf32>
    %2 = vector.broadcast %1 : vector<1x128xf32> to vector<64x128xf32>
    %3 = arith.mulf %0, %2 : vector<64x128xf32>
    %c0_3 = arith.constant 0 : index
    %c0_4 = arith.constant 0 : index
    %4 = vector.load %arg3[%c0_3, %c0_4] : memref<1x128xf32, #tpu.memory_space<vmem>>, vector<1x128xf32>
    %5 = vector.broadcast %4 : vector<1x128xf32> to vector<64x128xf32>
    %6 = arith.addf %3, %5 : vector<64x128xf32>
    %cst = arith.constant 0.000000e+00 : f32
    %7 = vector.broadcast %cst : f32 to vector<64x128xf32>
    %8 = arith.maximumf %6, %7 : vector<64x128xf32>
    %c0_5 = arith.constant 0 : index
    %c0_6 = arith.constant 0 : index
    %9 = vector.load %arg4[%c0_5, %c0_6] : memref<64x128xf32, #tpu.memory_space<vmem>>, vector<64x128xf32>
    tpu.vector_store %arg4[%c0_5, %c0_6], %8 {strides = array<i32>} : memref<64x128xf32, #tpu.memory_space<vmem>>, vector<64x128xf32>,
    return
  }
  func.func @transform_0(%arg0: i32) -> (i32, i32) {
    %c0_i32 = arith.constant 0 : i32
    %c0_i32_0 = arith.constant 0 : i32
    return %arg0, %c0_i32 : i32, i32
  }
  func.func @transform_1(%arg0: i32) -> (i32, i32) {
    %c0_i32 = arith.constant 0 : i32
    %c0_i32_0 = arith.constant 0 : i32
    %c0_i32_1 = arith.constant 0 : i32
    return %c0_i32, %c0_i32_0 : i32, i32
  }
  func.func @transform_2(%arg0: i32) -> (i32, i32) {
    %c0_i32 = arith.constant 0 : i32
    %c0_i32_0 = arith.constant 0 : i32
    %c0_i32_1 = arith.constant 0 : i32
    return %c0_i32, %c0_i32_0 : i32, i32
  }
  func.func @transform_3(%arg0: i32) -> (i32, i32) {
    %c0_i32 = arith.constant 0 : i32
    %c0_i32_0 = arith.constant 0 : i32
    return %arg0, %c0_i32 : i32, i32
  }
}

module attributes {stable_mosaic.version = 11 : i64} {
  func.func @_matmul_stats_kernel(%arg0: i32, %arg1: memref<256x72xbf16, #tpu.memory_space<vmem>>, %arg2: memref<72x8xbf16, #tpu.memory_space<vmem>>, %arg3: memref<256x8xf32, #tpu.memory_space<vmem>>, %arg4: memref<8x8xf32, #tpu.memory_space<vmem>>, %arg5: memref<8x8xf32, #tpu.memory_space<vmem>>) attributes {dimension_semantics = [#tpu.dimension_semantics<parallel>], iteration_bounds = array<i64: 8>, scalar_prefetch = 0 : i64, scratch_operands = 0 : i64, tpu.core_type = #tpu.core_type<tc>, window_params = [{transform_indices = @transform_0, window_bounds = array<i64: 256, 72>}, {pipeline_mode = #tpu.pipeline_mode<synchronous>, transform_indices = @transform_1, window_bounds = array<i64: 72, 8>}, {transform_indices = @transform_2, window_bounds = array<i64: 256, 8>}, {transform_indices = @transform_3, window_bounds = array<i64: 8, 8>}, {transform_indices = @transform_4, window_bounds = array<i64: 8, 8>}]} {
    %c0 = arith.constant 0 : index
    %c0_0 = arith.constant 0 : index
    %0 = vector.load %arg1[%c0, %c0_0] : memref<256x72xbf16, #tpu.memory_space<vmem>>, vector<256x72xbf16>
    %c0_1 = arith.constant 0 : index
    %c0_2 = arith.constant 0 : index
    %1 = vector.load %arg2[%c0_1, %c0_2] : memref<72x8xbf16, #tpu.memory_space<vmem>>, vector<72x8xbf16>
    %cst = arith.constant dense<0.000000e+00> : vector<256x8xf32>
    %2 = tpu.matmul %0, %1, %cst {dimension_numbers = #tpu.dot_dimension_numbers<[1], [0], [0], [1], [0, 0, 1, 1], [], []>} : vector<256x72xbf16>, vector<72x8xbf16>, vector<256x8xf32> -> vector<256x8xf32>
    %c0_3 = arith.constant 0 : index
    %c0_4 = arith.constant 0 : index
    %3 = vector.load %arg3[%c0_3, %c0_4] : memref<256x8xf32, #tpu.memory_space<vmem>>, vector<256x8xf32>
    tpu.vector_store %arg3[%c0_3, %c0_4], %2 {strides = array<i32>} : memref<256x8xf32, #tpu.memory_space<vmem>>, vector<256x8xf32>,
    %cst_5 = arith.constant dense<0.000000e+00> : vector<8xf32>
    %4 = vector.multi_reduction <add>, %2, %cst_5 [0] : vector<256x8xf32> to vector<8xf32>
    %5 = vector.shape_cast %4 : vector<8xf32> to vector<1x8xf32>
    %6 = arith.mulf %2, %2 : vector<256x8xf32>
    %cst_6 = arith.constant dense<0.000000e+00> : vector<8xf32>
    %7 = vector.multi_reduction <add>, %6, %cst_6 [0] : vector<256x8xf32> to vector<8xf32>
    %8 = vector.shape_cast %7 : vector<8xf32> to vector<1x8xf32>
    %9 = vector.shape_cast %5 : vector<1x8xf32> to vector<1x8xf32>
    %10 = vector.broadcast %9 : vector<1x8xf32> to vector<8x8xf32>
    %c0_7 = arith.constant 0 : index
    %c0_8 = arith.constant 0 : index
    %11 = vector.load %arg4[%c0_7, %c0_8] : memref<8x8xf32, #tpu.memory_space<vmem>>, vector<8x8xf32>
    tpu.vector_store %arg4[%c0_7, %c0_8], %10 {strides = array<i32>} : memref<8x8xf32, #tpu.memory_space<vmem>>, vector<8x8xf32>,
    %12 = vector.shape_cast %8 : vector<1x8xf32> to vector<1x8xf32>
    %13 = vector.broadcast %12 : vector<1x8xf32> to vector<8x8xf32>
    %c0_9 = arith.constant 0 : index
    %c0_10 = arith.constant 0 : index
    %14 = vector.load %arg5[%c0_9, %c0_10] : memref<8x8xf32, #tpu.memory_space<vmem>>, vector<8x8xf32>
    tpu.vector_store %arg5[%c0_9, %c0_10], %13 {strides = array<i32>} : memref<8x8xf32, #tpu.memory_space<vmem>>, vector<8x8xf32>,
    return
  }
  func.func @transform_0(%arg0: i32) -> (i32, i32) {
    %c0_i32 = arith.constant 0 : i32
    %c0_i32_0 = arith.constant 0 : i32
    return %arg0, %c0_i32 : i32, i32
  }
  func.func @transform_1(%arg0: i32) -> (i32, i32) {
    %c0_i32 = arith.constant 0 : i32
    %c0_i32_0 = arith.constant 0 : i32
    %c0_i32_1 = arith.constant 0 : i32
    return %c0_i32, %c0_i32_0 : i32, i32
  }
  func.func @transform_2(%arg0: i32) -> (i32, i32) {
    %c0_i32 = arith.constant 0 : i32
    %c0_i32_0 = arith.constant 0 : i32
    return %arg0, %c0_i32 : i32, i32
  }
  func.func @transform_3(%arg0: i32) -> (i32, i32) {
    %c0_i32 = arith.constant 0 : i32
    %c0_i32_0 = arith.constant 0 : i32
    return %arg0, %c0_i32 : i32, i32
  }
  func.func @transform_4(%arg0: i32) -> (i32, i32) {
    %c0_i32 = arith.constant 0 : i32
    %c0_i32_0 = arith.constant 0 : i32
    return %arg0, %c0_i32 : i32, i32
  }
}

module attributes {stable_mosaic.version = 11 : i64} {
  func.func @_bn_add_relu_kernel(%arg0: i32, %arg1: memref<64x128xf32, #tpu.memory_space<vmem>>, %arg2: memref<1x128xf32, #tpu.memory_space<vmem>>, %arg3: memref<1x128xf32, #tpu.memory_space<vmem>>, %arg4: memref<64x128xf32, #tpu.memory_space<vmem>>, %arg5: memref<64x128xf32, #tpu.memory_space<vmem>>) attributes {dimension_semantics = [#tpu.dimension_semantics<parallel>], iteration_bounds = array<i64: 2>, scalar_prefetch = 0 : i64, scratch_operands = 0 : i64, tpu.core_type = #tpu.core_type<tc>, window_params = [{transform_indices = @transform_0, window_bounds = array<i64: 64, 128>}, {pipeline_mode = #tpu.pipeline_mode<synchronous>, transform_indices = @transform_1, window_bounds = array<i64: 1, 128>}, {pipeline_mode = #tpu.pipeline_mode<synchronous>, transform_indices = @transform_2, window_bounds = array<i64: 1, 128>}, {transform_indices = @transform_3, window_bounds = array<i64: 64, 128>}, {transform_indices = @transform_4, window_bounds = array<i64: 64, 128>}]} {
    %c0 = arith.constant 0 : index
    %c0_0 = arith.constant 0 : index
    %0 = vector.load %arg1[%c0, %c0_0] : memref<64x128xf32, #tpu.memory_space<vmem>>, vector<64x128xf32>
    %c0_1 = arith.constant 0 : index
    %c0_2 = arith.constant 0 : index
    %1 = vector.load %arg2[%c0_1, %c0_2] : memref<1x128xf32, #tpu.memory_space<vmem>>, vector<1x128xf32>
    %2 = vector.broadcast %1 : vector<1x128xf32> to vector<64x128xf32>
    %3 = arith.mulf %0, %2 : vector<64x128xf32>
    %c0_3 = arith.constant 0 : index
    %c0_4 = arith.constant 0 : index
    %4 = vector.load %arg3[%c0_3, %c0_4] : memref<1x128xf32, #tpu.memory_space<vmem>>, vector<1x128xf32>
    %5 = vector.broadcast %4 : vector<1x128xf32> to vector<64x128xf32>
    %6 = arith.addf %3, %5 : vector<64x128xf32>
    %c0_5 = arith.constant 0 : index
    %c0_6 = arith.constant 0 : index
    %7 = vector.load %arg4[%c0_5, %c0_6] : memref<64x128xf32, #tpu.memory_space<vmem>>, vector<64x128xf32>
    %8 = arith.addf %6, %7 : vector<64x128xf32>
    %cst = arith.constant 0.000000e+00 : f32
    %9 = vector.broadcast %cst : f32 to vector<64x128xf32>
    %10 = arith.maximumf %8, %9 : vector<64x128xf32>
    %c0_7 = arith.constant 0 : index
    %c0_8 = arith.constant 0 : index
    %11 = vector.load %arg5[%c0_7, %c0_8] : memref<64x128xf32, #tpu.memory_space<vmem>>, vector<64x128xf32>
    tpu.vector_store %arg5[%c0_7, %c0_8], %10 {strides = array<i32>} : memref<64x128xf32, #tpu.memory_space<vmem>>, vector<64x128xf32>,
    return
  }
  func.func @transform_0(%arg0: i32) -> (i32, i32) {
    %c0_i32 = arith.constant 0 : i32
    %c0_i32_0 = arith.constant 0 : i32
    return %arg0, %c0_i32 : i32, i32
  }
  func.func @transform_1(%arg0: i32) -> (i32, i32) {
    %c0_i32 = arith.constant 0 : i32
    %c0_i32_0 = arith.constant 0 : i32
    %c0_i32_1 = arith.constant 0 : i32
    return %c0_i32, %c0_i32_0 : i32, i32
  }
  func.func @transform_2(%arg0: i32) -> (i32, i32) {
    %c0_i32 = arith.constant 0 : i32
    %c0_i32_0 = arith.constant 0 : i32
    %c0_i32_1 = arith.constant 0 : i32
    return %c0_i32, %c0_i32_0 : i32, i32
  }
  func.func @transform_3(%arg0: i32) -> (i32, i32) {
    %c0_i32 = arith.constant 0 : i32
    %c0_i32_0 = arith.constant 0 : i32
    return %arg0, %c0_i32 : i32, i32
  }
  func.func @transform_4(%arg0: i32) -> (i32, i32) {
    %c0_i32 = arith.constant 0 : i32
    %c0_i32_0 = arith.constant 0 : i32
    return %arg0, %c0_i32 : i32, i32
  }
}

</mosaic_0001>

<bundles_post_ra>
// kernel: tile.40
= control target key start
LH: loop header
LB: loop body
LE: loop exit
PB: predicated region body
PF: predicated region fallthrough
CT: control target
= control target key end

     0   :  { %s22_s0 = inlined_call_operand.vmem [shape: f32[8], index: 0, kind: input, shape index: {}]   ;;  %s23_s1 = inlined_call_operand.vmem [shape: f32[4,8], index: 1, kind: output, shape index: {}]  }
   0x1   :  { %v4_v0 = vld [vmem:[%s22_s0] ss:$0 sm:$0xff] }
   0x2   :  { %5 = vst [vmem:[%s23_s1] sm:$0xf] %v4_v0 }

// kernel: tile.43
= control target key start
LH: loop header
LB: loop body
LE: loop exit
PB: predicated region body
PF: predicated region fallthrough
CT: control target
= control target key end

     0   :  { %vm8_vm0 = vcmask 64512   ;;  %s40_s8 = smov 8   ;;  %s41_s9 = smov 16   ;;  %vm14_vm1 = vcmask 261312   ;;  %vm20_vm2 = vcmask 195712   ;;  %vm26_vm3 = vcmask 130112   ;;  %s58_s0 = inlined_call_operand.vmem [shape: f32[4,8], index: 0, kind: input, shape index: {}]   ;;  %s59_s1 = inlined_call_operand.vmem [shape: f32[32], index: 1, kind: output, shape index: {}]  }
   0x1   :  { %v5_v0 = vld [vmem:[%s58_s0] sm:$0xf]  ;;  %s39_s0 = smov 24  }
   0x2   :  { %6 = vst [vmem:[#allocation1] sm:$0xf] %v5_v0 }
   0x9   :  { %v11_v1 = vld [vmem:[#allocation1 + $0x3] sm:$0x1]   ;;  %v23_v2 = vld [vmem:[#allocation1 + $0x1] sm:$0x1]   ;;  %v7_v3 = vld [vmem:[#allocation1] sm:$0x1]  }
   0xa   :  { %12 = vrot.lane.b32.xlu0 %v11_v1, %s39_s0  ;;  %24 = vrot.lane.b32.xlu1 %v23_v2, %s40_s8  ;;  %v17_v4 = vld [vmem:[#allocation1 + $0x2] sm:$0x1]   ;;  %9 = vst.msk [vmem:[#allocation0] sm:$0x1] %vm8_vm0, %v7_v3  }
   0xe   :  { %18 = vrot.lane.b32.xlu0 %v17_v4, %s41_s9 }
  0x7c   :  { %v13_v5 = vpop.permute.xlu0 %12   ;;  %v25_v6 = vpop.permute.xlu1 %24  }
  0x7d   :  { %15 = vst.msk [vmem:[#allocation0] sm:$0x1] %vm14_vm1, %v13_v5  }
  0x80   :  { %v19_v7 = vpop.permute.xlu0 %18  }
  0x81   :  { %21 = vst.msk [vmem:[#allocation0] sm:$0x1] %vm20_vm2, %v19_v7  }
  0x82   :  { %27 = vst.msk [vmem:[#allocation0] sm:$0x1] %vm26_vm3, %v25_v6  }
  0x89   :  { %v32_v8 = vld [vmem:[#allocation0] sm:$0x1] }
  0x8a   :  { %35 = vst [vmem:[%s59_s1] sm:$0x1] %v32_v8 }

// kernel: tile.44
= control target key start
LH: loop header
LB: loop body
LE: loop exit
PB: predicated region body
PF: predicated region fallthrough
CT: control target
= control target key end

     0   :  { %s22_s0 = inlined_call_operand.vmem [shape: f32[32], index: 0, kind: input, shape index: {}]   ;;  %s23_s1 = inlined_call_operand.vmem [shape: f32[4,32], index: 1, kind: output, shape index: {}]  }
   0x1   :  { %v4_v0 = vld [vmem:[%s22_s0] ss:$0 sm:$0xff] }
   0x2   :  { %5 = vst [vmem:[%s23_s1] sm:$0xf] %v4_v0 }

// kernel: tile.45
= control target key start
LH: loop header
LB: loop body
LE: loop exit
PB: predicated region body
PF: predicated region fallthrough
CT: control target
= control target key end

     0   :  { %vm8_vm0 = vcmask 261120   ;;  %s40_s8 = smov 32   ;;  %s41_s9 = smov 64   ;;  %vm14_vm1 = vcmask 1048320   ;;  %vm20_vm2 = vcmask 785920   ;;  %vm26_vm3 = vcmask 523520   ;;  %s58_s0 = inlined_call_operand.vmem [shape: f32[4,32], index: 0, kind: input, shape index: {}]   ;;  %s59_s1 = inlined_call_operand.vmem [shape: f32[1,128], index: 1, kind: output, shape index: {}]  }
   0x1   :  { %v5_v0 = vld [vmem:[%s58_s0] sm:$0xf]  ;;  %s39_s0 = smov 96  }
   0x2   :  { %6 = vst [vmem:[#allocation1] sm:$0xf] %v5_v0 }
   0x9   :  { %v11_v1 = vld [vmem:[#allocation1 + $0x3] sm:$0x1]   ;;  %v23_v2 = vld [vmem:[#allocation1 + $0x1] sm:$0x1]   ;;  %v7_v3 = vld [vmem:[#allocation1] sm:$0x1]  }
   0xa   :  { %12 = vrot.lane.b32.xlu0 %v11_v1, %s39_s0  ;;  %24 = vrot.lane.b32.xlu1 %v23_v2, %s40_s8  ;;  %v17_v4 = vld [vmem:[#allocation1 + $0x2] sm:$0x1]   ;;  %9 = vst.msk [vmem:[#allocation0] sm:$0x1] %vm8_vm0, %v7_v3  }
   0xe   :  { %18 = vrot.lane.b32.xlu0 %v17_v4, %s41_s9 }
  0x7c   :  { %v13_v5 = vpop.permute.xlu0 %12   ;;  %v25_v6 = vpop.permute.xlu1 %24  }
  0x7d   :  { %15 = vst.msk [vmem:[#allocation0] sm:$0x1] %vm14_vm1, %v13_v5  }
  0x80   :  { %v19_v7 = vpop.permute.xlu0 %18  }
  0x81   :  { %21 = vst.msk [vmem:[#allocation0] sm:$0x1] %vm20_vm2, %v19_v7  }
  0x82   :  { %27 = vst.msk [vmem:[#allocation0] sm:$0x1] %vm26_vm3, %v25_v6  }
  0x89   :  { %v32_v8 = vld [vmem:[#allocation0] sm:$0x1] }
  0x8a   :  { %35 = vst [vmem:[%s59_s1] sm:$0x1] %v32_v8 }

// kernel: forward.4
= control target key start
LH: loop header
LB: loop body
LE: loop exit
PB: predicated region body
PF: predicated region fallthrough
CT: control target
= control target key end

     0   :  { %s1065_s15 = smov 0   ;;  %s1368_s0 = inlined_call_operand.vmem [shape: bf16[512,36], index: 0, kind: input, shape index: {}]   ;;  %s1369_s1 = inlined_call_operand.vmem [shape: bf16[36,64], index: 1, kind: input, shape index: {}]   ;;  %s1370_s2 = inlined_call_operand.vmem [shape: f32[512,64], index: 2, kind: output, shape index: {0}]   ;;  %s1371_s3 = inlined_call_operand.vmem [shape: f32[16,64], index: 3, kind: output, shape index: {1}]   ;;  %s1372_s4 = inlined_call_operand.vmem [shape: f32[16,64], index: 4, kind: output, shape index: {2}]  }
   0x1 LB: > { %s1071_s16 = sadd.s32 4294967295, %s1038_s15   ;;  %p896_p0 = scmp.ge.s32.totalorder %s1038_s15, 1  ;;  %s1038_s15 = sphi %s1065_s15, %s15_s15  }
   0x2   : > { %p168_p1 = scmp.lt.s32.totalorder %s1038_s15, 3 }
   0x4   : > { %p169_p2 = pnand %p896_p0, %p168_p1 }
   0x5   : > { %s897_s21 = sshll.u32 (!%p169_p2), %s1071_s16, 5  ;;  %p214_p4 = scmp.lt.s32.totalorder (!%p169_p2), %s1071_s16, 1 }
   0x6   : > { %172 = sbr.rel (%p169_p2) target bundleno = 301 (0x12d), region = 28  ;;  %p203_p3 = scmp.lt.s32.totalorder (!%p169_p2), %s897_s21, 63 }
   0xb   : > { %v1013_v0 = vld [vmem:[%s1369_s1 + $0x10] ss:$0 sps:$4 sm:$0x33]   ;;  %vm404_vm0 = vcmask 1041408   ;;  %v1014_v1 = vld [vmem:[%s1369_s1 + $0x8] sm:$0xff]   ;;  %v1015_v3 = vld [vmem:[%s1369_s1] sm:$0xff]  }
   0xc   : > { %1003 = vmatprep.subr.msk.bf16.mxu0 %vm404_vm0, %v1013_v0  ;;  %v406_v2 = vsel %vm404_vm0, %v1013_v0, 0  ;;  %1004 = vmatprep.subr.msk.bf16.mxu1 %vm404_vm0, %v1013_v0  ;;  %s1374_s21 = smov (!%p203_p3, %s897_s21), 63  ;;  %vm355_vm1 = vcmask 293888   ;;  %vm569_vm2 = vcmask 523264   ;;  %s1376_s16 = smov (!%p214_p4, %s1071_s16), 1 }
   0xd   : > { %960 = vmatpush3.bf16.msra.mxu0 %v406_v2  ;;  %1000 = vmatpush3.bf16.msra.mxu1 %v406_v2  ;;  %s898_s24 = sshll.u32 %s1374_s21, 2  ;;  %s900_s28 = sshll.u32 %s1374_s21, 3 }
   0xe   : > { %961 = vmatprep.subr.bf16.mxu0 %v1014_v1  ;;  %998 = vmatprep.subr.bf16.mxu1 %v1014_v1  ;;  %s1091_s27 = scalar_lea.vmem %s1368_s0, %s898_s24  ;;  %s1129_s5 = scalar_lea.vmem %s1370_s2, %s900_s28 }
   0xf   : > { %v1016_v4 = vld [vmem:[%s1091_s27] sm:$0xff]   ;;  %v1017_v5 = vld [vmem:[%s1091_s27 + $0x8] sm:$0xff]   ;;  %v1018_v6 = vld [vmem:[%s1091_s27 + $0x10] sm:$0xff]   ;;  %s901_s6 = sshll.u32 %s1376_s16, 3 }
  0x10   : > { %965 = vmatprep.mubr.msk.bf16.mxu0 %vm355_vm1, %v1016_v4  ;;  %v1019_v7 = vld [vmem:[%s1091_s27 + $0x18] sm:$0xff]   ;;  %v1020_v8 = vld [vmem:[%s1091_s27 + $0x20] sm:$0xff]   ;;  %v1025_v10 = vld [vmem:[%s1091_s27 + $0x48] sm:$0xff]   ;;  %s217_s9 = scalar_lea.vmem %s1371_s3, %s901_s6  ;;  %s221_s12 = scalar_lea.vmem %s1372_s4, %s901_s6 }
  0x11   : > { %962 = vmatpush3.bf16.msra.mxu0 %v1014_v1  ;;  %1001 = vmatpush3.bf16.msra.mxu1 %v1014_v1  ;;  %v1024_v9 = vld [vmem:[%s1091_s27 + $0x40] sm:$0xff]   ;;  %v1026_v11 = vld [vmem:[%s1091_s27 + $0x50] sm:$0xff]   ;;  %v1027_v12 = vld [vmem:[%s1091_s27 + $0x58] sm:$0xff]  }
  0x12   : > { %963 = vmatprep.subr.bf16.mxu0 %v1015_v3  ;;  %999 = vmatprep.subr.bf16.mxu1 %v1015_v3  ;;  %v1028_v13 = vld [vmem:[%s1091_s27 + $0x60] sm:$0xff]   ;;  %v1021_v14 = vld [vmem:[%s1091_s27 + $0x28] sm:$0xff]   ;;  %v1022_v15 = vld [vmem:[%s1091_s27 + $0x30] sm:$0xff]  }
  0x13   : > { %981 = vmatprep.mubr.msk.bf16.mxu1 %vm355_vm1, %v1024_v9  ;;  %v1029_v16 = vld [vmem:[%s1091_s27 + $0x68] sm:$0xff]   ;;  %v1030_v17 = vld [vmem:[%s1091_s27 + $0x70] sm:$0xff]   ;;  %v1023_v18 = vld [vmem:[%s1091_s27 + $0x38] sm:$0xff]  }
  0x14   : > { %v1031_v19 = vld [vmem:[%s1091_s27 + $0x78] sm:$0xff]  }
  0x15   : > { %964 = vmatpush3.bf16.msra.mxu0 %v1015_v3  ;;  %1002 = vmatpush3.bf16.msra.mxu1 %v1015_v3 }
  0x18   : > { %966 = vmatmul.mubr.msk.bf16.vlgmr.msra.gmra.mxu0 %vm355_vm1, %v1017_v5  ;;  %982 = vmatmul.mubr.msk.bf16.vlgmr.msra.gmra.mxu1 %vm355_vm1, %v1025_v10 }
  0x19   : > { %969 = vmatprep.mubr.msk.bf16.mxu0 %vm355_vm1, %v1018_v6  ;;  %985 = vmatprep.mubr.msk.bf16.mxu1 %vm355_vm1, %v1026_v11 }
  0x20   : > { %970 = vmatmul.mubr.msk.bf16.gmra.mxu0 %vm355_vm1, %v1019_v7  ;;  %986 = vmatmul.mubr.msk.bf16.gmra.mxu1 %vm355_vm1, %v1027_v12 }
  0x21   : > { %973 = vmatprep.mubr.msk.bf16.mxu0 %vm355_vm1, %v1020_v8  ;;  %989 = vmatprep.mubr.msk.bf16.mxu1 %vm355_vm1, %v1028_v13 }
  0x28   : > { %974 = vmatmul.mubr.msk.bf16.gmra.mxu0 %vm355_vm1, %v1021_v14  ;;  %990 = vmatmul.mubr.msk.bf16.gmra.mxu1 %vm355_vm1, %v1029_v16 }
  0x29   : > { %977 = vmatprep.mubr.msk.bf16.mxu0 %vm355_vm1, %v1022_v15  ;;  %993 = vmatprep.mubr.msk.bf16.mxu1 %vm355_vm1, %v1030_v17 }
  0x30   : > { %978 = vmatmul.mubr.msk.bf16.gmra.mxu0 %vm355_vm1, %v1023_v18  ;;  %994 = vmatmul.mubr.msk.bf16.gmra.mxu1 %vm355_vm1, %v1031_v19 }
  0xd8   : > { %v967_v20 = vpop.f32.mrf.mxu0  ;;  %v1137_v25 = vpop.f32.mrf.mxu1 }
  0xd9   : > { %572 = vst.msk [vmem:[%s1129_s5 + $0x10] sm:$0xff] %vm569_vm2, %v967_v20  ;;  %v673_v26 = vmul.f32 %v967_v20, %v967_v20  ;;  %588 = vst.msk [vmem:[%s1129_s5 + $0x90] sm:$0xff] %vm569_vm2, %v1137_v25  ;;  %v605_v33 = vsel %vm569_vm2, %v967_v20, 0.0 }
  0xda   : > { %v442_v21 = vpop.f32.mrf.mxu0  ;;  %v1146_v32 = vpop.f32.mrf.mxu1 }
  0xdb   : > { %570 = vst.msk [vmem:[%s1129_s5] sm:$0xff] %vm569_vm2, %v442_v21  ;;  %v671_v23 = vmul.f32 %v442_v21, %v442_v21  ;;  %v602_v27 = vsel %vm569_vm2, %v442_v21, 0.0  ;;  %586 = vst.msk [vmem:[%s1129_s5 + $0x80] sm:$0xff] %vm569_vm2, %v1146_v32  ;;  %v706_v41 = vsel %vm569_vm2, %v673_v26, 0.0 }
  0xdc   : > { %v968_v22 = vpop.f32.mrf.mxu0  ;;  %v1156_v40 = vpop.f32.mrf.mxu1 }
  0xdd   : > { %573 = vst.msk [vmem:[%s1129_s5 + $0x18] sm:$0xff] %vm569_vm2, %v968_v22  ;;  %v703_v34 = vsel %vm569_vm2, %v671_v23, 0.0  ;;  %v674_v35 = vmul.f32 %v968_v22, %v968_v22  ;;  %v607_v42 = vsel %vm569_vm2, %v968_v22, 0.0  ;;  %589 = vst.msk [vmem:[%s1129_s5 + $0x98] sm:$0xff] %vm569_vm2, %v1156_v40 }
  0xde   : > { %v445_v24 = vpop.f32.mrf.mxu0  ;;  %v1165_v47 = vpop.f32.mrf.mxu1 }
  0xdf   : > { %571 = vst.msk [vmem:[%s1129_s5 + $0x8] sm:$0xff] %vm569_vm2, %v445_v24  ;;  %v603_v28 = vsel %vm569_vm2, %v445_v24, 0.0  ;;  %v672_v29 = vmul.f32 %v445_v24, %v445_v24  ;;  %v708_v48 = vsel %vm569_vm2, %v674_v35, 0.0  ;;  %587 = vst.msk [vmem:[%s1129_s5 + $0x88] sm:$0xff] %vm569_vm2, %v1165_v47 }
  0xe0   : > { %v604_v30 = vadd.f32 %v603_v28, %v602_v27  ;;  %v971_v31 = vpop.f32.mrf.mxu0  ;;  %v1174_v53 = vpop.f32.mrf.mxu1 }
  0xe1   : > { %v704_v36 = vsel %vm569_vm2, %v672_v29, 0.0  ;;  %576 = vst.msk [vmem:[%s1129_s5 + $0x30] sm:$0xff] %vm569_vm2, %v971_v31  ;;  %v677_v54 = vmul.f32 %v971_v31, %v971_v31  ;;  %592 = vst.msk [vmem:[%s1129_s5 + $0xb0] sm:$0xff] %vm569_vm2, %v1174_v53  ;;  %v613_v62 = vsel %vm569_vm2, %v971_v31, 0.0 }
  0xe2   : > { %v606_v37 = vadd.f32 %v605_v33, %v604_v30  ;;  %v705_v38 = vadd.f32 %v704_v36, %v703_v34  ;;  %v458_v39 = vpop.f32.mrf.mxu0  ;;  %v1183_v61 = vpop.f32.mrf.mxu1 }
  0xe3   : > { %574 = vst.msk [vmem:[%s1129_s5 + $0x20] sm:$0xff] %vm569_vm2, %v458_v39  ;;  %v675_v43 = vmul.f32 %v458_v39, %v458_v39  ;;  %v609_v49 = vsel %vm569_vm2, %v458_v39, 0.0  ;;  %590 = vst.msk [vmem:[%s1129_s5 + $0xa0] sm:$0xff] %vm569_vm2, %v1183_v61  ;;  %v714_v5 = vsel %vm569_vm2, %v677_v54, 0.0 }
  0xe4   : > { %v707_v44 = vadd.f32 %v706_v41, %v705_v38  ;;  %v608_v45 = vadd.f32 %v607_v42, %v606_v37  ;;  %v972_v46 = vpop.f32.mrf.mxu0  ;;  %v1192_v4 = vpop.f32.mrf.mxu1 }
  0xe5   : > { %577 = vst.msk [vmem:[%s1129_s5 + $0x38] sm:$0xff] %vm569_vm2, %v972_v46  ;;  %v710_v55 = vsel %vm569_vm2, %v675_v43, 0.0  ;;  %v678_v63 = vmul.f32 %v972_v46, %v972_v46  ;;  %v615_v6 = vsel %vm569_vm2, %v972_v46, 0.0  ;;  %593 = vst.msk [vmem:[%s1129_s5 + $0xb8] sm:$0xff] %vm569_vm2, %v1192_v4 }
  0xe6   : > { %v610_v50 = vadd.f32 %v609_v49, %v608_v45  ;;  %v709_v51 = vadd.f32 %v708_v48, %v707_v44  ;;  %v461_v52 = vpop.f32.mrf.mxu0  ;;  %v1201_v11 = vpop.f32.mrf.mxu1 }
  0xe7   : > { %575 = vst.msk [vmem:[%s1129_s5 + $0x28] sm:$0xff] %vm569_vm2, %v461_v52  ;;  %v611_v56 = vsel %vm569_vm2, %v461_v52, 0.0  ;;  %v676_v57 = vmul.f32 %v461_v52, %v461_v52  ;;  %v716_v12 = vsel %vm569_vm2, %v678_v63, 0.0  ;;  %591 = vst.msk [vmem:[%s1129_s5 + $0xa8] sm:$0xff] %vm569_vm2, %v1201_v11 }
  0xe8   : > { %v711_v58 = vadd.f32 %v710_v55, %v709_v51  ;;  %v612_v59 = vadd.f32 %v611_v56, %v610_v50  ;;  %v975_v60 = vpop.f32.mrf.mxu0  ;;  %v1210_v17 = vpop.f32.mrf.mxu1 }
  0xe9   : > { %v712_v0 = vsel %vm569_vm2, %v676_v57, 0.0  ;;  %580 = vst.msk [vmem:[%s1129_s5 + $0x50] sm:$0xff] %vm569_vm2, %v975_v60  ;;  %v681_v18 = vmul.f32 %v975_v60, %v975_v60  ;;  %596 = vst.msk [vmem:[%s1129_s5 + $0xd0] sm:$0xff] %vm569_vm2, %v1210_v17  ;;  %v621_v27 = vsel %vm569_vm2, %v975_v60, 0.0 }
  0xea   : > { %v614_v1 = vadd.f32 %v613_v62, %v612_v59  ;;  %v713_v2 = vadd.f32 %v712_v0, %v711_v58  ;;  %v474_v3 = vpop.f32.mrf.mxu0  ;;  %v1219_v26 = vpop.f32.mrf.mxu1 }
  0xeb   : > { %578 = vst.msk [vmem:[%s1129_s5 + $0x40] sm:$0xff] %vm569_vm2, %v474_v3  ;;  %v679_v7 = vmul.f32 %v474_v3, %v474_v3  ;;  %v617_v13 = vsel %vm569_vm2, %v474_v3, 0.0  ;;  %594 = vst.msk [vmem:[%s1129_s5 + $0xc0] sm:$0xff] %vm569_vm2, %v1219_v26  ;;  %v722_v35 = vsel %vm569_vm2, %v681_v18, 0.0  ;;  %v687_v3 = vmul.f32 %v1146_v32, %v1146_v32 }
  0xec   : > { %v715_v8 = vadd.f32 %v714_v5, %v713_v2  ;;  %v616_v9 = vadd.f32 %v615_v6, %v614_v1  ;;  %v976_v10 = vpop.f32.mrf.mxu0  ;;  %v1228_v34 = vpop.f32.mrf.mxu1 }
  0xed   : > { %581 = vst.msk [vmem:[%s1129_s5 + $0x58] sm:$0xff] %vm569_vm2, %v976_v10  ;;  %v718_v19 = vsel %vm569_vm2, %v679_v7, 0.0  ;;  %v682_v28 = vmul.f32 %v976_v10, %v976_v10  ;;  %v623_v36 = vsel %vm569_vm2, %v976_v10, 0.0  ;;  %597 = vst.msk [vmem:[%s1129_s5 + $0xd8] sm:$0xff] %vm569_vm2, %v1228_v34  ;;  %v688_v10 = vmul.f32 %v1165_v47, %v1165_v47 }
  0xee   : > { %v618_v14 = vadd.f32 %v617_v13, %v616_v9  ;;  %v717_v15 = vadd.f32 %v716_v12, %v715_v8  ;;  %v477_v16 = vpop.f32.mrf.mxu0  ;;  %v1237_v42 = vpop.f32.mrf.mxu1  ;;  %v633_v9 = vsel %vm569_vm2, %v1146_v32, 0.0  ;;  %v637_v32 = vsel %vm569_vm2, %v1137_v25, 0.0 }
  0xef   : > { %579 = vst.msk [vmem:[%s1129_s5 + $0x48] sm:$0xff] %vm569_vm2, %v477_v16  ;;  %v619_v20 = vsel %vm569_vm2, %v477_v16, 0.0  ;;  %v680_v21 = vmul.f32 %v477_v16, %v477_v16  ;;  %v724_v43 = vsel %vm569_vm2, %v682_v28, 0.0  ;;  %595 = vst.msk [vmem:[%s1129_s5 + $0xc8] sm:$0xff] %vm569_vm2, %v1237_v42  ;;  %v635_v16 = vsel %vm569_vm2, %v1165_v47, 0.0 }
  0xf0   : > { %v719_v22 = vadd.f32 %v718_v19, %v717_v15  ;;  %v620_v23 = vadd.f32 %v619_v20, %v618_v14  ;;  %v979_v24 = vpop.f32.mrf.mxu0  ;;  %v1246_v49 = vpop.f32.mrf.mxu1  ;;  %v689_v14 = vmul.f32 %v1137_v25, %v1137_v25  ;;  %v734_v15 = vsel %vm569_vm2, %v687_v3, 0.0 }
  0xf1   : > { %v720_v29 = vsel %vm569_vm2, %v680_v21, 0.0  ;;  %584 = vst.msk [vmem:[%s1129_s5 + $0x70] sm:$0xff] %vm569_vm2, %v979_v24  ;;  %v685_v50 = vmul.f32 %v979_v24, %v979_v24  ;;  %600 = vst.msk [vmem:[%s1129_s5 + $0xf0] sm:$0xff] %vm569_vm2, %v1246_v49  ;;  %v629_v58 = vsel %vm569_vm2, %v979_v24, 0.0  ;;  %v690_v20 = vmul.f32 %v1156_v40, %v1156_v40 }
  0xf2   : > { %v622_v30 = vadd.f32 %v621_v27, %v620_v23  ;;  %v721_v31 = vadd.f32 %v720_v29, %v719_v22  ;;  %v490_v33 = vpop.f32.mrf.mxu0  ;;  %v1255_v57 = vpop.f32.mrf.mxu1  ;;  %v736_v21 = vsel %vm569_vm2, %v688_v10, 0.0  ;;  %v738_v24 = vsel %vm569_vm2, %v689_v14, 0.0 }
  0xf3   : > { %582 = vst.msk [vmem:[%s1129_s5 + $0x60] sm:$0xff] %vm569_vm2, %v490_v33  ;;  %v683_v37 = vmul.f32 %v490_v33, %v490_v33  ;;  %v625_v44 = vsel %vm569_vm2, %v490_v33, 0.0  ;;  %598 = vst.msk [vmem:[%s1129_s5 + $0xe0] sm:$0xff] %vm569_vm2, %v1255_v57  ;;  %v730_v1 = vsel %vm569_vm2, %v685_v50, 0.0  ;;  %v639_v27 = vsel %vm569_vm2, %v1156_v40, 0.0 }
  0xf4   : > { %v723_v38 = vadd.f32 %v722_v35, %v721_v31  ;;  %v624_v39 = vadd.f32 %v623_v36, %v622_v30  ;;  %v980_v41 = vpop.f32.mrf.mxu0  ;;  %v1262_v0 = vpop.f32.mrf.mxu1  ;;  %v691_v47 = vmul.f32 %v1183_v61, %v1183_v61  ;;  %v740_v30 = vsel %vm569_vm2, %v690_v20, 0.0 }
  0xf5   : > { %585 = vst.msk [vmem:[%s1129_s5 + $0x78] sm:$0xff] %vm569_vm2, %v980_v41  ;;  %v726_v51 = vsel %vm569_vm2, %v683_v37, 0.0  ;;  %v686_v59 = vmul.f32 %v980_v41, %v980_v41  ;;  %v631_v2 = vsel %vm569_vm2, %v980_v41, 0.0  ;;  %601 = vst.msk [vmem:[%s1129_s5 + $0xf8] sm:$0xff] %vm569_vm2, %v1262_v0  ;;  %v641_v25 = vsel %vm569_vm2, %v1183_v61, 0.0 }
  0xf6   : > { %v626_v45 = vadd.f32 %v625_v44, %v624_v39  ;;  %v725_v46 = vadd.f32 %v724_v43, %v723_v38  ;;  %v493_v48 = vpop.f32.mrf.mxu0  ;;  %v1271_v7 = vpop.f32.mrf.mxu1  ;;  %v692_v31 = vmul.f32 %v1201_v11, %v1201_v11  ;;  %v693_v36 = vmul.f32 %v1174_v53, %v1174_v53 }
  0xf7   : > { %583 = vst.msk [vmem:[%s1129_s5 + $0x68] sm:$0xff] %vm569_vm2, %v493_v48  ;;  %v627_v52 = vsel %vm569_vm2, %v493_v48, 0.0  ;;  %v684_v54 = vmul.f32 %v493_v48, %v493_v48  ;;  %v732_v8 = vsel %vm569_vm2, %v686_v59, 0.0  ;;  %599 = vst.msk [vmem:[%s1129_s5 + $0xe8] sm:$0xff] %vm569_vm2, %v1271_v7  ;;  %v742_v40 = vsel %vm569_vm2, %v691_v47, 0.0 }
  0xf8   : > { %v727_v55 = vadd.f32 %v726_v51, %v725_v46  ;;  %v628_v56 = vadd.f32 %v627_v52, %v626_v45  ;;  %v643_v37 = vsel %vm569_vm2, %v1201_v11, 0.0  ;;  %v645_v41 = vsel %vm569_vm2, %v1174_v53, 0.0 }
  0xf9   : > { %v728_v60 = vsel %vm569_vm2, %v684_v54, 0.0  ;;  %v694_v61 = vmul.f32 %v1192_v4, %v1192_v4  ;;  %v744_v43 = vsel %vm569_vm2, %v692_v31, 0.0  ;;  %v746_v46 = vsel %vm569_vm2, %v693_v36, 0.0 }
  0xfa   : > { %v630_v62 = vadd.f32 %v629_v58, %v628_v56  ;;  %v729_v63 = vadd.f32 %v728_v60, %v727_v55  ;;  %v647_v48 = vsel %vm569_vm2, %v1192_v4, 0.0  ;;  %v695_v11 = vmul.f32 %v1219_v26, %v1219_v26 }
  0xfb   : > { %v748_v52 = vsel %vm569_vm2, %v694_v61, 0.0  ;;  %v649_v53 = vsel %vm569_vm2, %v1219_v26, 0.0  ;;  %v696_v54 = vmul.f32 %v1237_v42, %v1237_v42  ;;  %v697_v58 = vmul.f32 %v1210_v17, %v1210_v17 }
  0xfc   : > { %v632_v5 = vadd.f32 %v631_v2, %v630_v62  ;;  %v731_v6 = vadd.f32 %v730_v1, %v729_v63  ;;  %v750_v4 = vsel %vm569_vm2, %v695_v11, 0.0  ;;  %v651_v59 = vsel %vm569_vm2, %v1237_v42, 0.0 }
  0xfd   : > { %v653_v63 = vsel %vm569_vm2, %v1210_v17, 0.0  ;;  %v698_v26 = vmul.f32 %v1228_v34, %v1228_v34  ;;  %v752_v1 = vsel %vm569_vm2, %v696_v54, 0.0  ;;  %v699_v42 = vmul.f32 %v1255_v57, %v1255_v57 }
  0xfe   : > { %v733_v12 = vadd.f32 %v732_v8, %v731_v6  ;;  %v634_v13 = vadd.f32 %v633_v9, %v632_v5  ;;  %v754_v5 = vsel %vm569_vm2, %v697_v58, 0.0  ;;  %v655_v6 = vsel %vm569_vm2, %v1228_v34, 0.0 }
  0xff   : > { %v756_v10 = vsel %vm569_vm2, %v698_v26, 0.0  ;;  %v657_v17 = vsel %vm569_vm2, %v1255_v57, 0.0  ;;  %v758_v34 = vsel %vm569_vm2, %v699_v42, 0.0  ;;  %v661_v57 = vsel %vm569_vm2, %v1246_v49, 0.0 }
 0x100   : > { %v636_v18 = vadd.f32 %v635_v16, %v634_v13  ;;  %v735_v19 = vadd.f32 %v734_v15, %v733_v12  ;;  %v700_v12 = vmul.f32 %v1271_v7, %v1271_v7  ;;  %v701_v15 = vmul.f32 %v1246_v49, %v1246_v49 }
 0x101   : > { %v659_v16 = vsel %vm569_vm2, %v1271_v7, 0.0 }
 0x102   : > { %v638_v22 = vadd.f32 %v637_v32, %v636_v18  ;;  %v737_v23 = vadd.f32 %v736_v21, %v735_v19  ;;  %v702_v32 = vmul.f32 %v1262_v0, %v1262_v0  ;;  %v760_v20 = vsel %vm569_vm2, %v700_v12, 0.0 }
 0x104   : > { %v739_v28 = vadd.f32 %v738_v24, %v737_v23  ;;  %v640_v29 = vadd.f32 %v639_v27, %v638_v22  ;;  %v762_v23 = vsel %vm569_vm2, %v701_v15, 0.0  ;;  %v663_v24 = vsel %vm569_vm2, %v1262_v0, 0.0 }
 0x105   : > { %v764_v47 = vsel %vm569_vm2, %v702_v32, 0.0 }
 0x106   : > { %v642_v33 = vadd.f32 %v641_v25, %v640_v29  ;;  %v741_v35 = vadd.f32 %v740_v30, %v739_v28 }
 0x108   : > { %v743_v38 = vadd.f32 %v742_v40, %v741_v35  ;;  %v644_v39 = vadd.f32 %v643_v37, %v642_v33 }
 0x10a   : > { %v646_v44 = vadd.f32 %v645_v41, %v644_v39  ;;  %v745_v45 = vadd.f32 %v744_v43, %v743_v38 }
 0x10c   : > { %v747_v50 = vadd.f32 %v746_v46, %v745_v45  ;;  %v648_v51 = vadd.f32 %v647_v48, %v646_v44 }
 0x10e   : > { %v650_v55 = vadd.f32 %v649_v53, %v648_v51  ;;  %v749_v56 = vadd.f32 %v748_v52, %v747_v50 }
 0x110   : > { %v751_v60 = vadd.f32 %v750_v4, %v749_v56  ;;  %v652_v62 = vadd.f32 %v651_v59, %v650_v55 }
 0x112   : > { %v654_v2 = vadd.f32 %v653_v63, %v652_v62  ;;  %v753_v3 = vadd.f32 %v752_v1, %v751_v60 }
 0x114   : > { %v755_v8 = vadd.f32 %v754_v5, %v753_v3  ;;  %v656_v9 = vadd.f32 %v655_v6, %v654_v2 }
 0x116   : > { %v658_v13 = vadd.f32 %v657_v17, %v656_v9  ;;  %v757_v14 = vadd.f32 %v756_v10, %v755_v8 }
 0x118   : > { %v759_v18 = vadd.f32 %v758_v34, %v757_v14  ;;  %v660_v19 = vadd.f32 %v659_v16, %v658_v13 }
 0x11a   : > { %v662_v21 = vadd.f32 %v661_v57, %v660_v19  ;;  %v761_v22 = vadd.f32 %v760_v20, %v759_v18 }
 0x11c   : > { %v664_v7 = vadd.f32 %v663_v24, %v662_v21  ;;  %v763_v27 = vadd.f32 %v762_v23, %v761_v22 }
 0x11e   : > { %v665_v28 = vrot.slane %v664_v7, 4  ;;  %v765_v29 = vadd.f32 %v764_v47, %v763_v27 }
 0x120   : > { %v666_v49 = vadd.f32 %v665_v28, %v664_v7  ;;  %v766_v30 = vrot.slane %v765_v29, 4 }
 0x122   : > { %v667_v25 = vrot.slane %v666_v49, 2  ;;  %v767_v31 = vadd.f32 %v766_v30, %v765_v29 }
 0x124   : > { %v668_v33 = vadd.f32 %v667_v25, %v666_v49  ;;  %v768_v35 = vrot.slane %v767_v31, 2 }
 0x126   : > { %v669_v36 = vrot.slane %v668_v33, 1  ;;  %v769_v40 = vadd.f32 %v768_v35, %v767_v31 }
 0x128   : > { %v670_v0 = vadd.f32 %v669_v36, %v668_v33  ;;  %v770_v37 = vrot.slane %v769_v40, 1 }
 0x12a   : > { %v771_v38 = vadd.f32 %v770_v37, %v769_v40  ;;  %772 = vst.msk [vmem:[%s217_s9] sm:$0xff] %vm569_vm2, %v670_v0 }
 0x12c   : > { %773 = vst.msk [vmem:[%s221_s12] sm:$0xff] %vm569_vm2, %v771_v38 }
 0x12d PF: > { %s15_s15 = sadd.s32 1, %s1038_s15  }
 0x12e   : > { %p12_p5 = scmp.ge.s32.totalorder %s15_s15, 4  }
 0x130   :  { %14 = sbr.rel (!%p12_p5) target bundleno = 1 (0x1), region = 82 }

// kernel: forward.5
= control target key start
LH: loop header
LB: loop body
LE: loop exit
PB: predicated region body
PF: predicated region fallthrough
CT: control target
= control target key end

     0   :  { %s333_s12 = smov 0   ;;  %s356_s0 = inlined_call_operand.vmem [shape: f32[128,128], index: 0, kind: input, shape index: {}]   ;;  %s357_s1 = inlined_call_operand.vmem [shape: f32[1,128], index: 1, kind: input, shape index: {}]   ;;  %s358_s2 = inlined_call_operand.vmem [shape: f32[1,128], index: 2, kind: input, shape index: {}]   ;;  %s359_s3 = inlined_call_operand.vmem [shape: f32[128,128], index: 3, kind: output, shape index: {}]  }
   0x1 LB: > { %s284_s13 = sadd.s32 4294967295, %s311_s12   ;;  %p288_p0 = scmp.ge.s32.totalorder %s311_s12, 1  ;;  %s311_s12 = sphi %s333_s12, %s13_s12  }
   0x2   : > { %p138_p1 = scmp.lt.s32.totalorder %s311_s12, 3 }
   0x4   : > { %p139_p2 = pnand %p288_p0, %p138_p1 }
   0x5   : > { %s289_s14 = sshll.u32 (!%p139_p2), %s284_s13, 3 }
   0x6   : > { %142 = sbr.rel (%p139_p2) target bundleno = 25 (0x19), region = 32  ;;  %p163_p3 = scmp.lt.s32.totalorder (!%p139_p2), %s289_s14, 15 }
   0xb   : > { %s361_s14 = smov (!%p163_p3, %s289_s14), 15  ;;  %v293_v0 = vld [vmem:[%s357_s1] ss:$0 sm:$0xff] }
   0xc   : > { %s290_s15 = sshll.u32 %s361_s14, 3  ;;  %v294_v1 = vld [vmem:[%s358_s2] ss:$0 sm:$0xff] }
   0xd   : > { %s166_s20 = scalar_lea.vmem %s356_s0, %s290_s15  ;;  %s172_s25 = scalar_lea.vmem %s359_s3, %s290_s15 }
   0xe   : > { %v174_v2 = vld [vmem:[%s166_s20] sm:$0xff]  ;;  %v175_v3 = vld [vmem:[%s166_s20 + $0x8] sm:$0xff]  ;;  %v176_v4 = vld [vmem:[%s166_s20 + $0x10] sm:$0xff] }
   0xf   : > { %v189_v5 = vmul.f32 %v293_v0, %v174_v2  ;;  %v190_v6 = vmul.f32 %v293_v0, %v175_v3  ;;  %v191_v7 = vmul.f32 %v293_v0, %v176_v4  ;;  %v177_v8 = vld [vmem:[%s166_s20 + $0x18] sm:$0xff]  ;;  %v178_v9 = vld [vmem:[%s166_s20 + $0x20] sm:$0xff]  ;;  %v179_v10 = vld [vmem:[%s166_s20 + $0x28] sm:$0xff] }
  0x10   : > { %v192_v11 = vmul.f32 %v293_v0, %v177_v8  ;;  %v193_v12 = vmul.f32 %v293_v0, %v178_v9  ;;  %v194_v13 = vmul.f32 %v293_v0, %v179_v10  ;;  %v180_v14 = vld [vmem:[%s166_s20 + $0x30] sm:$0xff]  ;;  %v181_v15 = vld [vmem:[%s166_s20 + $0x38] sm:$0xff] }
  0x11   : > { %v204_v16 = vadd.f32 %v294_v1, %v189_v5  ;;  %v205_v17 = vadd.f32 %v294_v1, %v190_v6  ;;  %v206_v18 = vadd.f32 %v294_v1, %v191_v7  ;;  %v195_v19 = vmul.f32 %v293_v0, %v180_v14 }
  0x12   : > { %v207_v20 = vadd.f32 %v294_v1, %v192_v11  ;;  %v208_v21 = vadd.f32 %v294_v1, %v193_v12  ;;  %v209_v22 = vadd.f32 %v294_v1, %v194_v13  ;;  %v196_v23 = vmul.f32 %v293_v0, %v181_v15 }
  0x13   : > { %v212_v24 = vmax.f32 %v204_v16, 0.0  ;;  %v213_v25 = vmax.f32 %v205_v17, 0.0  ;;  %v214_v26 = vmax.f32 %v206_v18, 0.0  ;;  %v210_v27 = vadd.f32 %v294_v1, %v195_v19 }
  0x14   : > { %v215_v28 = vmax.f32 %v207_v20, 0.0  ;;  %v216_v29 = vmax.f32 %v208_v21, 0.0  ;;  %v217_v30 = vmax.f32 %v209_v22, 0.0  ;;  %v211_v31 = vadd.f32 %v294_v1, %v196_v23 }
  0x15   : > { %220 = vst [vmem:[%s172_s25] sm:$0xff] %v212_v24  ;;  %221 = vst [vmem:[%s172_s25 + $0x8] sm:$0xff] %v213_v25  ;;  %v218_v32 = vmax.f32 %v210_v27, 0.0 }
  0x16   : > { %222 = vst [vmem:[%s172_s25 + $0x10] sm:$0xff] %v214_v26  ;;  %223 = vst [vmem:[%s172_s25 + $0x18] sm:$0xff] %v215_v28  ;;  %v219_v33 = vmax.f32 %v211_v31, 0.0 }
  0x17   : > { %224 = vst [vmem:[%s172_s25 + $0x20] sm:$0xff] %v216_v29  ;;  %225 = vst [vmem:[%s172_s25 + $0x28] sm:$0xff] %v217_v30 }
  0x18   : > { %226 = vst [vmem:[%s172_s25 + $0x30] sm:$0xff] %v218_v32  ;;  %227 = vst [vmem:[%s172_s25 + $0x38] sm:$0xff] %v219_v33 }
  0x19 PF: > { %s13_s12 = sadd.s32 1, %s311_s12  }
  0x1a   : > { %p10_p4 = scmp.ge.s32.totalorder %s13_s12, 4  }
  0x1c   :  { %12 = sbr.rel (!%p10_p4) target bundleno = 1 (0x1), region = 62 }

// kernel: forward.6
= control target key start
LH: loop header
LB: loop body
LE: loop exit
PB: predicated region body
PF: predicated region fallthrough
CT: control target
= control target key end

     0   :  { %s1095_s15 = smov 0   ;;  %s1404_s0 = inlined_call_operand.vmem [shape: bf16[2048,72], index: 0, kind: input, shape index: {}]   ;;  %s1405_s1 = inlined_call_operand.vmem [shape: bf16[72,8], index: 1, kind: input, shape index: {}]   ;;  %s1406_s2 = inlined_call_operand.vmem [shape: f32[2048,8], index: 2, kind: output, shape index: {0}]   ;;  %s1407_s3 = inlined_call_operand.vmem [shape: f32[64,8], index: 3, kind: output, shape index: {1}]   ;;  %s1408_s4 = inlined_call_operand.vmem [shape: f32[64,8], index: 4, kind: output, shape index: {2}]  }
   0x1 LB: > { %s1101_s16 = sadd.s32 4294967295, %s1068_s15   ;;  %p912_p0 = scmp.ge.s32.totalorder %s1068_s15, 1  ;;  %s1068_s15 = sphi %s1095_s15, %s15_s15  }
   0x2   : > { %p168_p1 = scmp.lt.s32.totalorder %s1068_s15, 9 }
   0x4   : > { %p169_p2 = pnand %p912_p0, %p168_p1 }
   0x5   : > { %s913_s21 = sshll.u32 (!%p169_p2), %s1101_s16, 5  ;;  %p214_p4 = scmp.lt.s32.totalorder (!%p169_p2), %s1101_s16, 7 }
   0x6   : > { %172 = sbr.rel (%p169_p2) target bundleno = 309 (0x135), region = 28  ;;  %p203_p3 = scmp.lt.s32.totalorder (!%p169_p2), %s913_s21, 255 }
   0xb   : > { %v1041_v0 = vld [vmem:[%s1405_s1 + $0x20] ss:$0 sps:$4 sm:$0xff]   ;;  %vm420_vm0 = vcmask 1043456   ;;  %v1042_v1 = vld [vmem:[%s1405_s1 + $0x18] sm:$0xff]   ;;  %v1043_v3 = vld [vmem:[%s1405_s1 + $0x10] sm:$0xff]   ;;  %s1410_s21 = smov (!%p203_p3, %s913_s21), 255 }
   0xc   : > { %1031 = vmatprep.subr.msk.bf16.mxu0 %vm420_vm0, %v1041_v0  ;;  %v422_v2 = vsel %vm420_vm0, %v1041_v0, 0  ;;  %1032 = vmatprep.subr.msk.bf16.mxu1 %vm420_vm0, %v1041_v0  ;;  %v1044_v4 = vld [vmem:[%s1405_s1 + $0x8] sm:$0xff]   ;;  %s914_s26 = sshll.u32 %s1410_s21, 2  ;;  %vm371_vm1 = vcmask 588800   ;;  %v1045_v6 = vld [vmem:[%s1405_s1] sm:$0xff]   ;;  %s916_s6 = sshll.u32 %s1410_s21, 3 }
   0xd   : > { %980 = vmatpush3.bf16.msra.mxu0 %v422_v2  ;;  %1026 = vmatpush3.bf16.msra.mxu1 %v422_v2  ;;  %s1124_s29 = scalar_lea.vmem %s1404_s0, %s914_s26  ;;  %s1165_s9 = scalar_lea.vmem %s1406_s2, %s916_s6  ;;  %vm585_vm2 = vcmask 64512  }
   0xe   : > { %981 = vmatprep.subr.bf16.mxu0 %v1042_v1  ;;  %1022 = vmatprep.subr.bf16.mxu1 %v1042_v1  ;;  %v1046_v5 = vld [vmem:[%s1124_s29] sm:$0xff]   ;;  %v1047_v7 = vld [vmem:[%s1124_s29 + $0x8] sm:$0xff]   ;;  %v1048_v8 = vld [vmem:[%s1124_s29 + $0x10] sm:$0xff]   ;;  %s1412_s16 = smov (!%p214_p4, %s1101_s16), 7 }
   0xf   : > { %989 = vmatprep.mubr.msk.bf16.mxu0 %vm371_vm1, %v1046_v5  ;;  %v1054_v9 = vld [vmem:[%s1124_s29 + $0x40] sm:$0xff]   ;;  %v1055_v10 = vld [vmem:[%s1124_s29 + $0x48] sm:$0xff]   ;;  %v1056_v11 = vld [vmem:[%s1124_s29 + $0x50] sm:$0xff]   ;;  %s917_s10 = sshll.u32 %s1412_s16, 3 }
  0x10   : > { %1005 = vmatprep.mubr.msk.bf16.mxu1 %vm371_vm1, %v1054_v9  ;;  %v1049_v12 = vld [vmem:[%s1124_s29 + $0x18] sm:$0xff]   ;;  %v1050_v14 = vld [vmem:[%s1124_s29 + $0x20] sm:$0xff]   ;;  %v1051_v16 = vld [vmem:[%s1124_s29 + $0x28] sm:$0xff]   ;;  %s217_s13 = scalar_lea.vmem %s1407_s3, %s917_s10  ;;  %s221_s18 = scalar_lea.vmem %s1408_s4, %s917_s10 }
  0x11   : > { %982 = vmatpush3.bf16.msra.mxu0 %v1042_v1  ;;  %1027 = vmatpush3.bf16.msra.mxu1 %v1042_v1  ;;  %v1057_v13 = vld [vmem:[%s1124_s29 + $0x58] sm:$0xff]   ;;  %v1058_v15 = vld [vmem:[%s1124_s29 + $0x60] sm:$0xff]   ;;  %v1059_v17 = vld [vmem:[%s1124_s29 + $0x68] sm:$0xff]  }
  0x12   : > { %983 = vmatprep.subr.bf16.mxu0 %v1043_v3  ;;  %1023 = vmatprep.subr.bf16.mxu1 %v1043_v3  ;;  %v1052_v18 = vld [vmem:[%s1124_s29 + $0x30] sm:$0xff]   ;;  %v1053_v20 = vld [vmem:[%s1124_s29 + $0x38] sm:$0xff]  }
  0x13   : > { %v1060_v19 = vld [vmem:[%s1124_s29 + $0x70] sm:$0xff]   ;;  %v1061_v21 = vld [vmem:[%s1124_s29 + $0x78] sm:$0xff]  }
  0x15   : > { %984 = vmatpush3.bf16.msra.mxu0 %v1043_v3  ;;  %1028 = vmatpush3.bf16.msra.mxu1 %v1043_v3 }
  0x16   : > { %985 = vmatprep.subr.bf16.mxu0 %v1044_v4  ;;  %1024 = vmatprep.subr.bf16.mxu1 %v1044_v4 }
  0x19   : > { %986 = vmatpush3.bf16.msra.mxu0 %v1044_v4  ;;  %1029 = vmatpush3.bf16.msra.mxu1 %v1044_v4 }
  0x1a   : > { %987 = vmatprep.subr.bf16.mxu0 %v1045_v6  ;;  %1025 = vmatprep.subr.bf16.mxu1 %v1045_v6 }
  0x1d   : > { %988 = vmatpush3.bf16.msra.mxu0 %v1045_v6  ;;  %1030 = vmatpush3.bf16.msra.mxu1 %v1045_v6 }
  0x20   : > { %990 = vmatmul.mubr.msk.bf16.vlgmr.msra.gmra.mxu0 %vm371_vm1, %v1047_v7  ;;  %1006 = vmatmul.mubr.msk.bf16.vlgmr.msra.gmra.mxu1 %vm371_vm1, %v1055_v10 }
  0x21   : > { %993 = vmatprep.mubr.msk.bf16.mxu0 %vm371_vm1, %v1048_v8  ;;  %1009 = vmatprep.mubr.msk.bf16.mxu1 %vm371_vm1, %v1056_v11 }
  0x28   : > { %994 = vmatmul.mubr.msk.bf16.gmra.mxu0 %vm371_vm1, %v1049_v12  ;;  %1010 = vmatmul.mubr.msk.bf16.gmra.mxu1 %vm371_vm1, %v1057_v13 }
  0x29   : > { %997 = vmatprep.mubr.msk.bf16.mxu0 %vm371_vm1, %v1050_v14  ;;  %1013 = vmatprep.mubr.msk.bf16.mxu1 %vm371_vm1, %v1058_v15 }
  0x30   : > { %998 = vmatmul.mubr.msk.bf16.gmra.mxu0 %vm371_vm1, %v1051_v16  ;;  %1014 = vmatmul.mubr.msk.bf16.gmra.mxu1 %vm371_vm1, %v1059_v17 }
  0x31   : > { %1001 = vmatprep.mubr.msk.bf16.mxu0 %vm371_vm1, %v1052_v18  ;;  %1017 = vmatprep.mubr.msk.bf16.mxu1 %vm371_vm1, %v1060_v19 }
  0x38   : > { %1002 = vmatmul.mubr.msk.bf16.gmra.mxu0 %vm371_vm1, %v1053_v20  ;;  %1018 = vmatmul.mubr.msk.bf16.gmra.mxu1 %vm371_vm1, %v1061_v21 }
  0xe0   : > { %v991_v22 = vpop.f32.mrf.mxu0  ;;  %v1167_v23 = vpop.f32.mrf.mxu1 }
  0xe1   : > { %588 = vst.msk [vmem:[%s1165_s9 + $0x10] sm:$0xff] %vm585_vm2, %v991_v22  ;;  %604 = vst.msk [vmem:[%s1165_s9 + $0x90] sm:$0xff] %vm585_vm2, %v1167_v23  ;;  %v689_v31 = vmul.f32 %v991_v22, %v991_v22  ;;  %v621_v38 = vsel %vm585_vm2, %v991_v22, 0.0 }
  0xe2   : > { %v458_v24 = vpop.f32.mrf.mxu0  ;;  %v1174_v25 = vpop.f32.mrf.mxu1 }
  0xe3   : > { %586 = vst.msk [vmem:[%s1165_s9] sm:$0xff] %vm585_vm2, %v458_v24  ;;  %602 = vst.msk [vmem:[%s1165_s9 + $0x80] sm:$0xff] %vm585_vm2, %v1174_v25  ;;  %v687_v28 = vmul.f32 %v458_v24, %v458_v24  ;;  %v618_v32 = vsel %vm585_vm2, %v458_v24, 0.0  ;;  %v722_v46 = vsel %vm585_vm2, %v689_v31, 0.0 }
  0xe4   : > { %v992_v26 = vpop.f32.mrf.mxu0  ;;  %v1181_v27 = vpop.f32.mrf.mxu1 }
  0xe5   : > { %589 = vst.msk [vmem:[%s1165_s9 + $0x18] sm:$0xff] %vm585_vm2, %v992_v26  ;;  %605 = vst.msk [vmem:[%s1165_s9 + $0x98] sm:$0xff] %vm585_vm2, %v1181_v27  ;;  %v719_v39 = vsel %vm585_vm2, %v687_v28, 0.0  ;;  %v690_v40 = vmul.f32 %v992_v26, %v992_v26  ;;  %v623_v47 = vsel %vm585_vm2, %v992_v26, 0.0 }
  0xe6   : > { %v461_v29 = vpop.f32.mrf.mxu0  ;;  %v1188_v30 = vpop.f32.mrf.mxu1 }
  0xe7   : > { %587 = vst.msk [vmem:[%s1165_s9 + $0x8] sm:$0xff] %vm585_vm2, %v461_v29  ;;  %v619_v33 = vsel %vm585_vm2, %v461_v29, 0.0  ;;  %v688_v34 = vmul.f32 %v461_v29, %v461_v29  ;;  %603 = vst.msk [vmem:[%s1165_s9 + $0x88] sm:$0xff] %vm585_vm2, %v1188_v30  ;;  %v724_v53 = vsel %vm585_vm2, %v690_v40, 0.0 }
  0xe8   : > { %v620_v35 = vadd.f32 %v619_v33, %v618_v32  ;;  %v995_v36 = vpop.f32.mrf.mxu0  ;;  %v1197_v37 = vpop.f32.mrf.mxu1 }
  0xe9   : > { %v720_v41 = vsel %vm585_vm2, %v688_v34, 0.0  ;;  %592 = vst.msk [vmem:[%s1165_s9 + $0x30] sm:$0xff] %vm585_vm2, %v995_v36  ;;  %608 = vst.msk [vmem:[%s1165_s9 + $0xb0] sm:$0xff] %vm585_vm2, %v1197_v37  ;;  %v693_v59 = vmul.f32 %v995_v36, %v995_v36  ;;  %v629_v3 = vsel %vm585_vm2, %v995_v36, 0.0 }
  0xea   : > { %v622_v42 = vadd.f32 %v621_v38, %v620_v35  ;;  %v721_v43 = vadd.f32 %v720_v41, %v719_v39  ;;  %v474_v44 = vpop.f32.mrf.mxu0  ;;  %v1207_v45 = vpop.f32.mrf.mxu1 }
  0xeb   : > { %590 = vst.msk [vmem:[%s1165_s9 + $0x20] sm:$0xff] %vm585_vm2, %v474_v44  ;;  %v691_v48 = vmul.f32 %v474_v44, %v474_v44  ;;  %606 = vst.msk [vmem:[%s1165_s9 + $0xa0] sm:$0xff] %vm585_vm2, %v1207_v45  ;;  %v625_v54 = vsel %vm585_vm2, %v474_v44, 0.0  ;;  %v730_v10 = vsel %vm585_vm2, %v693_v59, 0.0 }
  0xec   : > { %v723_v49 = vadd.f32 %v722_v46, %v721_v43  ;;  %v624_v50 = vadd.f32 %v623_v47, %v622_v42  ;;  %v996_v51 = vpop.f32.mrf.mxu0  ;;  %v1216_v52 = vpop.f32.mrf.mxu1 }
  0xed   : > { %593 = vst.msk [vmem:[%s1165_s9 + $0x38] sm:$0xff] %vm585_vm2, %v996_v51  ;;  %609 = vst.msk [vmem:[%s1165_s9 + $0xb8] sm:$0xff] %vm585_vm2, %v1216_v52  ;;  %v726_v60 = vsel %vm585_vm2, %v691_v48, 0.0  ;;  %v694_v4 = vmul.f32 %v996_v51, %v996_v51  ;;  %v631_v11 = vsel %vm585_vm2, %v996_v51, 0.0 }
  0xee   : > { %v626_v55 = vadd.f32 %v625_v54, %v624_v50  ;;  %v725_v56 = vadd.f32 %v724_v53, %v723_v49  ;;  %v477_v57 = vpop.f32.mrf.mxu0  ;;  %v1225_v58 = vpop.f32.mrf.mxu1 }
  0xef   : > { %591 = vst.msk [vmem:[%s1165_s9 + $0x28] sm:$0xff] %vm585_vm2, %v477_v57  ;;  %v627_v61 = vsel %vm585_vm2, %v477_v57, 0.0  ;;  %v692_v62 = vmul.f32 %v477_v57, %v477_v57  ;;  %607 = vst.msk [vmem:[%s1165_s9 + $0xa8] sm:$0xff] %vm585_vm2, %v1225_v58  ;;  %v732_v17 = vsel %vm585_vm2, %v694_v4, 0.0 }
  0xf0   : > { %v727_v63 = vadd.f32 %v726_v60, %v725_v56  ;;  %v628_v0 = vadd.f32 %v627_v61, %v626_v55  ;;  %v999_v1 = vpop.f32.mrf.mxu0  ;;  %v1234_v2 = vpop.f32.mrf.mxu1 }
  0xf1   : > { %v728_v5 = vsel %vm585_vm2, %v692_v62, 0.0  ;;  %596 = vst.msk [vmem:[%s1165_s9 + $0x50] sm:$0xff] %vm585_vm2, %v999_v1  ;;  %612 = vst.msk [vmem:[%s1165_s9 + $0xd0] sm:$0xff] %vm585_vm2, %v1234_v2  ;;  %v697_v24 = vmul.f32 %v999_v1, %v999_v1  ;;  %v637_v35 = vsel %vm585_vm2, %v999_v1, 0.0 }
  0xf2   : > { %v630_v6 = vadd.f32 %v629_v3, %v628_v0  ;;  %v729_v7 = vadd.f32 %v728_v5, %v727_v63  ;;  %v490_v8 = vpop.f32.mrf.mxu0  ;;  %v1243_v9 = vpop.f32.mrf.mxu1 }
  0xf3   : > { %594 = vst.msk [vmem:[%s1165_s9 + $0x40] sm:$0xff] %vm585_vm2, %v490_v8  ;;  %v695_v12 = vmul.f32 %v490_v8, %v490_v8  ;;  %610 = vst.msk [vmem:[%s1165_s9 + $0xc0] sm:$0xff] %vm585_vm2, %v1243_v9  ;;  %v633_v18 = vsel %vm585_vm2, %v490_v8, 0.0  ;;  %v738_v43 = vsel %vm585_vm2, %v697_v24, 0.0 }
  0xf4   : > { %v731_v13 = vadd.f32 %v730_v10, %v729_v7  ;;  %v632_v14 = vadd.f32 %v631_v11, %v630_v6  ;;  %v1000_v15 = vpop.f32.mrf.mxu0  ;;  %v1252_v16 = vpop.f32.mrf.mxu1  ;;  %v703_v10 = vmul.f32 %v1174_v25, %v1174_v25 }
  0xf5   : > { %597 = vst.msk [vmem:[%s1165_s9 + $0x58] sm:$0xff] %vm585_vm2, %v1000_v15  ;;  %613 = vst.msk [vmem:[%s1165_s9 + $0xd8] sm:$0xff] %vm585_vm2, %v1252_v16  ;;  %v734_v26 = vsel %vm585_vm2, %v695_v12, 0.0  ;;  %v698_v36 = vmul.f32 %v1000_v15, %v1000_v15  ;;  %v639_v44 = vsel %vm585_vm2, %v1000_v15, 0.0  ;;  %v704_v15 = vmul.f32 %v1188_v30, %v1188_v30 }
  0xf6   : > { %v634_v19 = vadd.f32 %v633_v18, %v632_v14  ;;  %v733_v20 = vadd.f32 %v732_v17, %v731_v13  ;;  %v493_v21 = vpop.f32.mrf.mxu0  ;;  %v1261_v22 = vpop.f32.mrf.mxu1  ;;  %v649_v14 = vsel %vm585_vm2, %v1174_v25, 0.0  ;;  %v706_v25 = vmul.f32 %v1181_v27, %v1181_v27 }
  0xf7   : > { %595 = vst.msk [vmem:[%s1165_s9 + $0x48] sm:$0xff] %vm585_vm2, %v493_v21  ;;  %v635_v28 = vsel %vm585_vm2, %v493_v21, 0.0  ;;  %v696_v29 = vmul.f32 %v493_v21, %v493_v21  ;;  %611 = vst.msk [vmem:[%s1165_s9 + $0xc8] sm:$0xff] %vm585_vm2, %v1261_v22  ;;  %v740_v51 = vsel %vm585_vm2, %v698_v36, 0.0  ;;  %v651_v21 = vsel %vm585_vm2, %v1188_v30, 0.0 }
  0xf8   : > { %v735_v31 = vadd.f32 %v734_v26, %v733_v20  ;;  %v636_v32 = vadd.f32 %v635_v28, %v634_v19  ;;  %v1003_v33 = vpop.f32.mrf.mxu0  ;;  %v1270_v34 = vpop.f32.mrf.mxu1  ;;  %v705_v19 = vmul.f32 %v1167_v23, %v1167_v23  ;;  %v750_v20 = vsel %vm585_vm2, %v703_v10, 0.0 }
  0xf9   : > { %v736_v38 = vsel %vm585_vm2, %v696_v29, 0.0  ;;  %600 = vst.msk [vmem:[%s1165_s9 + $0x70] sm:$0xff] %vm585_vm2, %v1003_v33  ;;  %616 = vst.msk [vmem:[%s1165_s9 + $0xf0] sm:$0xff] %vm585_vm2, %v1270_v34  ;;  %v701_v59 = vmul.f32 %v1003_v33, %v1003_v33  ;;  %v645_v1 = vsel %vm585_vm2, %v1003_v33, 0.0  ;;  %v653_v28 = vsel %vm585_vm2, %v1167_v23, 0.0 }
  0xfa   : > { %v638_v39 = vadd.f32 %v637_v35, %v636_v32  ;;  %v737_v40 = vadd.f32 %v736_v38, %v735_v31  ;;  %v506_v41 = vpop.f32.mrf.mxu0  ;;  %v1279_v42 = vpop.f32.mrf.mxu1  ;;  %v752_v29 = vsel %vm585_vm2, %v704_v15, 0.0  ;;  %v754_v33 = vsel %vm585_vm2, %v705_v19, 0.0 }
  0xfb   : > { %598 = vst.msk [vmem:[%s1165_s9 + $0x60] sm:$0xff] %vm585_vm2, %v506_v41  ;;  %v699_v46 = vmul.f32 %v506_v41, %v506_v41  ;;  %614 = vst.msk [vmem:[%s1165_s9 + $0xe0] sm:$0xff] %vm585_vm2, %v1279_v42  ;;  %v641_v53 = vsel %vm585_vm2, %v506_v41, 0.0  ;;  %v746_v7 = vsel %vm585_vm2, %v701_v59, 0.0  ;;  %v655_v35 = vsel %vm585_vm2, %v1181_v27, 0.0 }
  0xfc   : > { %v739_v47 = vadd.f32 %v738_v43, %v737_v40  ;;  %v640_v48 = vadd.f32 %v639_v44, %v638_v39  ;;  %v1004_v49 = vpop.f32.mrf.mxu0  ;;  %v1288_v50 = vpop.f32.mrf.mxu1  ;;  %v707_v30 = vmul.f32 %v1207_v45, %v1207_v45  ;;  %v756_v39 = vsel %vm585_vm2, %v706_v25, 0.0 }
  0xfd   : > { %601 = vst.msk [vmem:[%s1165_s9 + $0x78] sm:$0xff] %vm585_vm2, %v1004_v49  ;;  %617 = vst.msk [vmem:[%s1165_s9 + $0xf8] sm:$0xff] %vm585_vm2, %v1288_v50  ;;  %v742_v60 = vsel %vm585_vm2, %v699_v46, 0.0  ;;  %v702_v3 = vmul.f32 %v1004_v49, %v1004_v49  ;;  %v647_v8 = vsel %vm585_vm2, %v1004_v49, 0.0  ;;  %v657_v23 = vsel %vm585_vm2, %v1207_v45, 0.0 }
  0xfe   : > { %v642_v54 = vadd.f32 %v641_v53, %v640_v48  ;;  %v741_v55 = vadd.f32 %v740_v51, %v739_v47  ;;  %v509_v56 = vpop.f32.mrf.mxu0  ;;  %v1297_v57 = vpop.f32.mrf.mxu1  ;;  %v708_v40 = vmul.f32 %v1225_v58, %v1225_v58  ;;  %v709_v44 = vmul.f32 %v1197_v37, %v1197_v37 }
  0xff   : > { %599 = vst.msk [vmem:[%s1165_s9 + $0x68] sm:$0xff] %vm585_vm2, %v509_v56  ;;  %v643_v61 = vsel %vm585_vm2, %v509_v56, 0.0  ;;  %v700_v62 = vmul.f32 %v509_v56, %v509_v56  ;;  %615 = vst.msk [vmem:[%s1165_s9 + $0xe8] sm:$0xff] %vm585_vm2, %v1297_v57  ;;  %v748_v13 = vsel %vm585_vm2, %v702_v3, 0.0  ;;  %v758_v27 = vsel %vm585_vm2, %v707_v30, 0.0 }
 0x100   : > { %v743_v63 = vadd.f32 %v742_v60, %v741_v55  ;;  %v644_v0 = vadd.f32 %v643_v61, %v642_v54  ;;  %v659_v46 = vsel %vm585_vm2, %v1225_v58, 0.0  ;;  %v661_v49 = vsel %vm585_vm2, %v1197_v37, 0.0 }
 0x101   : > { %v744_v4 = vsel %vm585_vm2, %v700_v62, 0.0  ;;  %v710_v45 = vmul.f32 %v1216_v52, %v1216_v52  ;;  %v760_v51 = vsel %vm585_vm2, %v708_v40, 0.0  ;;  %v762_v55 = vsel %vm585_vm2, %v709_v44, 0.0 }
 0x102   : > { %v646_v5 = vadd.f32 %v645_v1, %v644_v0  ;;  %v745_v6 = vadd.f32 %v744_v4, %v743_v63  ;;  %v663_v56 = vsel %vm585_vm2, %v1216_v52, 0.0  ;;  %v711_v58 = vmul.f32 %v1243_v9, %v1243_v9 }
 0x103   : > { %v764_v61 = vsel %vm585_vm2, %v710_v45, 0.0  ;;  %v665_v37 = vsel %vm585_vm2, %v1243_v9, 0.0  ;;  %v712_v62 = vmul.f32 %v1261_v22, %v1261_v22  ;;  %v713_v1 = vmul.f32 %v1234_v2, %v1234_v2 }
 0x104   : > { %v648_v11 = vadd.f32 %v647_v8, %v646_v5  ;;  %v747_v12 = vadd.f32 %v746_v7, %v745_v6  ;;  %v766_v52 = vsel %vm585_vm2, %v711_v58, 0.0  ;;  %v667_v3 = vsel %vm585_vm2, %v1261_v22, 0.0 }
 0x105   : > { %v669_v6 = vsel %vm585_vm2, %v1234_v2, 0.0  ;;  %v714_v9 = vmul.f32 %v1252_v16, %v1252_v16  ;;  %v768_v7 = vsel %vm585_vm2, %v712_v62, 0.0  ;;  %v715_v22 = vmul.f32 %v1279_v42, %v1279_v42 }
 0x106   : > { %v749_v17 = vadd.f32 %v748_v13, %v747_v12  ;;  %v650_v18 = vadd.f32 %v649_v14, %v648_v11  ;;  %v770_v11 = vsel %vm585_vm2, %v713_v1, 0.0  ;;  %v671_v12 = vsel %vm585_vm2, %v1252_v16, 0.0 }
 0x107   : > { %v772_v15 = vsel %vm585_vm2, %v714_v9, 0.0  ;;  %v673_v2 = vsel %vm585_vm2, %v1279_v42, 0.0  ;;  %v774_v16 = vsel %vm585_vm2, %v715_v22, 0.0  ;;  %v677_v42 = vsel %vm585_vm2, %v1270_v34, 0.0 }
 0x108   : > { %v652_v24 = vadd.f32 %v651_v21, %v650_v18  ;;  %v751_v26 = vadd.f32 %v750_v20, %v749_v17  ;;  %v716_v17 = vmul.f32 %v1297_v57, %v1297_v57  ;;  %v717_v20 = vmul.f32 %v1270_v34, %v1270_v34 }
 0x109   : > { %v675_v21 = vsel %vm585_vm2, %v1297_v57, 0.0 }
 0x10a   : > { %v654_v31 = vadd.f32 %v653_v28, %v652_v24  ;;  %v753_v32 = vadd.f32 %v752_v29, %v751_v26  ;;  %v718_v28 = vmul.f32 %v1288_v50, %v1288_v50  ;;  %v776_v25 = vsel %vm585_vm2, %v716_v17, 0.0 }
 0x10c   : > { %v755_v36 = vadd.f32 %v754_v33, %v753_v32  ;;  %v656_v38 = vadd.f32 %v655_v35, %v654_v31  ;;  %v778_v32 = vsel %vm585_vm2, %v717_v20, 0.0  ;;  %v679_v33 = vsel %vm585_vm2, %v1288_v50, 0.0 }
 0x10d   : > { %v780_v30 = vsel %vm585_vm2, %v718_v28, 0.0 }
 0x10e   : > { %v658_v41 = vadd.f32 %v657_v23, %v656_v38  ;;  %v757_v43 = vadd.f32 %v756_v39, %v755_v36 }
 0x110   : > { %v759_v47 = vadd.f32 %v758_v27, %v757_v43  ;;  %v660_v48 = vadd.f32 %v659_v46, %v658_v41 }
 0x112   : > { %v662_v53 = vadd.f32 %v661_v49, %v660_v48  ;;  %v761_v54 = vadd.f32 %v760_v51, %v759_v47 }
 0x114   : > { %v763_v59 = vadd.f32 %v762_v55, %v761_v54  ;;  %v664_v60 = vadd.f32 %v663_v56, %v662_v53 }
 0x116   : > { %v666_v63 = vadd.f32 %v665_v37, %v664_v60  ;;  %v765_v0 = vadd.f32 %v764_v61, %v763_v59 }
 0x118   : > { %v767_v4 = vadd.f32 %v766_v52, %v765_v0  ;;  %v668_v5 = vadd.f32 %v667_v3, %v666_v63 }
 0x11a   : > { %v670_v8 = vadd.f32 %v669_v6, %v668_v5  ;;  %v769_v10 = vadd.f32 %v768_v7, %v767_v4 }
 0x11c   : > { %v771_v13 = vadd.f32 %v770_v11, %v769_v10  ;;  %v672_v14 = vadd.f32 %v671_v12, %v670_v8 }
 0x11e   : > { %v674_v18 = vadd.f32 %v673_v2, %v672_v14  ;;  %v773_v19 = vadd.f32 %v772_v15, %v771_v13 }
 0x120   : > { %v775_v24 = vadd.f32 %v774_v16, %v773_v19  ;;  %v676_v26 = vadd.f32 %v675_v21, %v674_v18 }
 0x122   : > { %v678_v29 = vadd.f32 %v677_v42, %v676_v26  ;;  %v777_v31 = vadd.f32 %v776_v25, %v775_v24 }
 0x124   : > { %v680_v57 = vadd.f32 %v679_v33, %v678_v29  ;;  %v779_v35 = vadd.f32 %v778_v32, %v777_v31 }
 0x126   : > { %v681_v36 = vrot.slane %v680_v57, 4  ;;  %v781_v38 = vadd.f32 %v780_v30, %v779_v35 }
 0x128   : > { %v682_v34 = vadd.f32 %v681_v36, %v680_v57  ;;  %v782_v39 = vrot.slane %v781_v38, 4 }
 0x12a   : > { %v683_v23 = vrot.slane %v682_v34, 2  ;;  %v783_v40 = vadd.f32 %v782_v39, %v781_v38 }
 0x12c   : > { %v684_v41 = vadd.f32 %v683_v23, %v682_v34  ;;  %v784_v43 = vrot.slane %v783_v40, 2 }
 0x12e   : > { %v685_v44 = vrot.slane %v684_v41, 1  ;;  %v785_v27 = vadd.f32 %v784_v43, %v783_v40 }
 0x130   : > { %v686_v50 = vadd.f32 %v685_v44, %v684_v41  ;;  %v786_v46 = vrot.slane %v785_v27, 1 }
 0x132   : > { %v787_v47 = vadd.f32 %v786_v46, %v785_v27  ;;  %788 = vst.msk [vmem:[%s217_s13] sm:$0xff] %vm585_vm2, %v686_v50 }
 0x134   : > { %789 = vst.msk [vmem:[%s221_s18] sm:$0xff] %vm585_vm2, %v787_v47 }
 0x135 PF: > { %s15_s15 = sadd.s32 1, %s1068_s15  }
 0x136   : > { %p12_p5 = scmp.ge.s32.totalorder %s15_s15, 10  }
 0x138   :  { %14 = sbr.rel (!%p12_p5) target bundleno = 1 (0x1), region = 82 }

// kernel: tile.54
= control target key start
LH: loop header
LB: loop body
LE: loop exit
PB: predicated region body
PF: predicated region fallthrough
CT: control target
= control target key end

     0   :  { %s28_s0 = inlined_call_operand.vmem [shape: f32[8], index: 0, kind: input, shape index: {}]   ;;  %s29_s1 = inlined_call_operand.vmem [shape: f32[16,8], index: 1, kind: output, shape index: {}]  }
   0x1   :  { %v4_v0 = vld [vmem:[%s28_s0] ss:$0 sm:$0xff] }
   0x2   :  { %5 = vst [vmem:[%s29_s1] sm:$0xff] %v4_v0  ;;  %8 = vst [vmem:[%s29_s1 + $0x8] sm:$0xff] %v4_v0 }

// kernel: tile.55
= control target key start
LH: loop header
LB: loop body
LE: loop exit
PB: predicated region body
PF: predicated region fallthrough
CT: control target
= control target key end

     0   :  { %s133_s10 = smov 120   ;;  %s134_s11 = smov 104   ;;  %vm3_vm0 = vcmask 64512   ;;  %vm9_vm1 = vcmask 1048512   ;;  %vm15_vm2 = vcmask 982912   ;;  %vm21_vm3 = vcmask 917312   ;;  %s209_s0 = inlined_call_operand.vmem [shape: f32[16,8], index: 0, kind: input, shape index: {}]   ;;  %s210_s1 = inlined_call_operand.vmem [shape: f32[1,128], index: 1, kind: output, shape index: {}]  }
   0x1   :  { %v103_v0 = vld [vmem:[%s209_s0 + $0xf] sm:$0x1]   ;;  %v105_v1 = vld [vmem:[%s209_s0 + $0xd] sm:$0x1]   ;;  %v104_v2 = vld [vmem:[%s209_s0 + $0xe] sm:$0x1]  }
   0x2   :  { %7 = vrot.lane.b32.xlu0 %v103_v0, %s133_s10  ;;  %19 = vrot.lane.b32.xlu1 %v105_v1, %s134_s11  ;;  %v106_v3 = vld [vmem:[%s209_s0 + $0xc] sm:$0x1]   ;;  %s135_s16 = smov 112   ;;  %s136_s17 = smov 96   ;;  %v107_v4 = vld [vmem:[%s209_s0 + $0xb] sm:$0x1]  }
   0x3   :  { %v108_v5 = vld [vmem:[%s209_s0 + $0xa] sm:$0x1]   ;;  %v2_v6 = vld [vmem:[%s209_s0] sm:$0x1]   ;;  %s137_s24 = smov 88   ;;  %s138_s25 = smov 80  }
   0x4   :  { %4 = vst.msk [vmem:[#allocation0] sm:$0x1] %vm3_vm0, %v2_v6   ;;  %v109_v7 = vld [vmem:[%s209_s0 + $0x9] sm:$0x1]   ;;  %v110_v8 = vld [vmem:[%s209_s0 + $0x8] sm:$0x1]  }
   0x5   :  { %s139_s30 = smov 72   ;;  %s140_s2 = smov 64   ;;  %v111_v9 = vld [vmem:[%s209_s0 + $0x7] sm:$0x1]   ;;  %v112_v10 = vld [vmem:[%s209_s0 + $0x6] sm:$0x1]  }
   0x6   :  { %13 = vrot.lane.b32.xlu0 %v104_v2, %s135_s16  ;;  %25 = vrot.lane.b32.xlu1 %v106_v3, %s136_s17  ;;  %s141_s7 = smov 56   ;;  %s142_s8 = smov 48   ;;  %v113_v11 = vld [vmem:[%s209_s0 + $0x5] sm:$0x1]   ;;  %v114_v12 = vld [vmem:[%s209_s0 + $0x4] sm:$0x1]  }
   0x7   :  { %s143_s13 = smov 40   ;;  %s144_s14 = smov 32   ;;  %v115_v13 = vld [vmem:[%s209_s0 + $0x3] sm:$0x1]   ;;  %v116_v14 = vld [vmem:[%s209_s0 + $0x2] sm:$0x1]  }
   0x8   :  { %s145_s19 = smov 24   ;;  %s146_s20 = smov 16   ;;  %v117_v15 = vld [vmem:[%s209_s0 + $0x1] sm:$0x1]   ;;  %vm27_vm4 = vcmask 851712   ;;  %vm33_vm5 = vcmask 786112  }
   0x9   :  { %s147_s0 = smov 8   ;;  %vm39_vm6 = vcmask 720512   ;;  %vm45_vm7 = vcmask 654912   ;;  %vm51_vm8 = vcmask 589312   ;;  %vm57_vm9 = vcmask 523712  }
   0xa   :  { %31 = vrot.lane.b32.xlu0 %v107_v4, %s137_s24  ;;  %37 = vrot.lane.b32.xlu1 %v108_v5, %s138_s25  ;;  %vm63_vm10 = vcmask 458112   ;;  %vm69_vm11 = vcmask 392512   ;;  %vm75_vm12 = vcmask 326912   ;;  %vm81_vm13 = vcmask 261312  }
   0xb   :  { %vm87_vm14 = vcmask 195712   ;;  %vm93_vm15 = vcmask 130112  }
   0xe   :  { %43 = vrot.lane.b32.xlu0 %v109_v7, %s139_s30  ;;  %49 = vrot.lane.b32.xlu1 %v110_v8, %s140_s2 }
  0x12   :  { %55 = vrot.lane.b32.xlu0 %v111_v9, %s141_s7  ;;  %61 = vrot.lane.b32.xlu1 %v112_v10, %s142_s8 }
  0x16   :  { %67 = vrot.lane.b32.xlu0 %v113_v11, %s143_s13  ;;  %73 = vrot.lane.b32.xlu1 %v114_v12, %s144_s14 }
  0x1a   :  { %79 = vrot.lane.b32.xlu0 %v115_v13, %s145_s19  ;;  %85 = vrot.lane.b32.xlu1 %v116_v14, %s146_s20 }
  0x1e   :  { %91 = vrot.lane.b32.xlu0 %v117_v15, %s147_s0 }
  0x74   :  { %v8_v16 = vpop.permute.xlu0 %7   ;;  %v20_v17 = vpop.permute.xlu1 %19  }
  0x75   :  { %10 = vst.msk [vmem:[#allocation0] sm:$0x1] %vm9_vm1, %v8_v16  }
  0x78   :  { %v14_v18 = vpop.permute.xlu0 %13   ;;  %v26_v19 = vpop.permute.xlu1 %25  }
  0x79   :  { %16 = vst.msk [vmem:[#allocation0] sm:$0x1] %vm15_vm2, %v14_v18  }
  0x7a   :  { %22 = vst.msk [vmem:[#allocation0] sm:$0x1] %vm21_vm3, %v20_v17  }
  0x7b   :  { %28 = vst.msk [vmem:[#allocation0] sm:$0x1] %vm27_vm4, %v26_v19  }
  0x7c   :  { %v32_v20 = vpop.permute.xlu0 %31   ;;  %v38_v21 = vpop.permute.xlu1 %37  }
  0x7d   :  { %34 = vst.msk [vmem:[#allocation0] sm:$0x1] %vm33_vm5, %v32_v20  }
  0x7e   :  { %40 = vst.msk [vmem:[#allocation0] sm:$0x1] %vm39_vm6, %v38_v21  }
  0x80   :  { %v44_v22 = vpop.permute.xlu0 %43   ;;  %v50_v23 = vpop.permute.xlu1 %49  }
  0x81   :  { %46 = vst.msk [vmem:[#allocation0] sm:$0x1] %vm45_vm7, %v44_v22  }
  0x82   :  { %52 = vst.msk [vmem:[#allocation0] sm:$0x1] %vm51_vm8, %v50_v23  }
  0x84   :  { %v56_v24 = vpop.permute.xlu0 %55   ;;  %v62_v25 = vpop.permute.xlu1 %61  }
  0x85   :  { %58 = vst.msk [vmem:[#allocation0] sm:$0x1] %vm57_vm9, %v56_v24  }
  0x86   :  { %64 = vst.msk [vmem:[#allocation0] sm:$0x1] %vm63_vm10, %v62_v25  }
  0x88   :  { %v68_v26 = vpop.permute.xlu0 %67   ;;  %v74_v27 = vpop.permute.xlu1 %73  }
  0x89   :  { %70 = vst.msk [vmem:[#allocation0] sm:$0x1] %vm69_vm11, %v68_v26  }
  0x8a   :  { %76 = vst.msk [vmem:[#allocation0] sm:$0x1] %vm75_vm12, %v74_v27  }
  0x8c   :  { %v80_v28 = vpop.permute.xlu0 %79   ;;  %v86_v29 = vpop.permute.xlu1 %85  }
  0x8d   :  { %82 = vst.msk [vmem:[#allocation0] sm:$0x1] %vm81_vm13, %v80_v28  }
  0x8e   :  { %88 = vst.msk [vmem:[#allocation0] sm:$0x1] %vm87_vm14, %v86_v29  }
  0x90   :  { %v92_v30 = vpop.permute.xlu0 %91  }
  0x91   :  { %94 = vst.msk [vmem:[#allocation0] sm:$0x1] %vm93_vm15, %v92_v30  }
  0x98   :  { %v99_v31 = vld [vmem:[#allocation0] sm:$0x1] }
  0x99   :  { %102 = vst [vmem:[%s210_s1] sm:$0x1] %v99_v31 }

// kernel: forward.7
= control target key start
LH: loop header
LB: loop body
LE: loop exit
PB: predicated region body
PF: predicated region fallthrough
CT: control target
= control target key end

     0   :  { %s417_s15 = smov 0   ;;  %s458_s0 = inlined_call_operand.vmem [shape: f32[128,128], index: 0, kind: input, shape index: {}]   ;;  %s459_s1 = inlined_call_operand.vmem [shape: f32[1,128], index: 1, kind: input, shape index: {}]   ;;  %s460_s2 = inlined_call_operand.vmem [shape: f32[1,128], index: 2, kind: input, shape index: {}]   ;;  %s461_s3 = inlined_call_operand.vmem [shape: f32[128,128], index: 3, kind: input, shape index: {}]   ;;  %s462_s4 = inlined_call_operand.vmem [shape: f32[128,128], index: 4, kind: output, shape index: {}]  }
   0x1 LB: > { %s361_s16 = sadd.s32 4294967295, %s390_s15   ;;  %p365_p0 = scmp.ge.s32.totalorder %s390_s15, 1  ;;  %s390_s15 = sphi %s417_s15, %s14_s15  }
   0x2   : > { %p174_p1 = scmp.lt.s32.totalorder %s390_s15, 3 }
   0x4   : > { %p175_p2 = pnand %p365_p0, %p174_p1 }
   0x5   : > { %s366_s17 = sshll.u32 (!%p175_p2), %s361_s16, 3 }
   0x6   : > { %178 = sbr.rel (%p175_p2) target bundleno = 29 (0x1d), region = 36  ;;  %p206_p3 = scmp.lt.s32.totalorder (!%p175_p2), %s366_s17, 15 }
   0xb   : > { %s464_s17 = smov (!%p206_p3, %s366_s17), 15  ;;  %v372_v0 = vld [vmem:[%s459_s1] ss:$0 sm:$0xff] }
   0xc   : > { %s425_s18 = sshll.u32 %s464_s17, 3  ;;  %v373_v2 = vld [vmem:[%s460_s2] ss:$0 sm:$0xff] }
   0xd   : > { %s209_s23 = scalar_lea.vmem %s458_s0, %s425_s18  ;;  %s438_s26 = scalar_lea.vmem %s461_s3, %s425_s18 }
   0xe   : > { %v223_v1 = vld [vmem:[%s209_s23] sm:$0xff]  ;;  %v224_v3 = vld [vmem:[%s209_s23 + $0x8] sm:$0xff]  ;;  %v225_v7 = vld [vmem:[%s209_s23 + $0x10] sm:$0xff]  ;;  %s221_s5 = scalar_lea.vmem %s462_s4, %s425_s18 }
   0xf   : > { %v238_v4 = vmul.f32 %v372_v0, %v223_v1  ;;  %v261_v5 = vld [vmem:[%s438_s26] sm:$0xff]  ;;  %v239_v6 = vmul.f32 %v372_v0, %v224_v3  ;;  %v262_v8 = vld [vmem:[%s438_s26 + $0x8] sm:$0xff]  ;;  %v240_v9 = vmul.f32 %v372_v0, %v225_v7  ;;  %v226_v10 = vld [vmem:[%s209_s23 + $0x18] sm:$0xff] }
  0x10   : > { %v227_v11 = vld [vmem:[%s209_s23 + $0x20] sm:$0xff]  ;;  %v263_v14 = vld [vmem:[%s438_s26 + $0x10] sm:$0xff]  ;;  %v241_v15 = vmul.f32 %v372_v0, %v226_v10  ;;  %v264_v16 = vld [vmem:[%s438_s26 + $0x18] sm:$0xff] }
  0x11   : > { %v253_v12 = vadd.f32 %v373_v2, %v238_v4  ;;  %v254_v13 = vadd.f32 %v373_v2, %v239_v6  ;;  %v242_v17 = vmul.f32 %v372_v0, %v227_v11  ;;  %v228_v18 = vld [vmem:[%s209_s23 + $0x28] sm:$0xff]  ;;  %v255_v19 = vadd.f32 %v373_v2, %v240_v9  ;;  %v265_v20 = vld [vmem:[%s438_s26 + $0x20] sm:$0xff]  ;;  %v229_v22 = vld [vmem:[%s209_s23 + $0x30] sm:$0xff] }
  0x12   : > { %v243_v21 = vmul.f32 %v372_v0, %v228_v18  ;;  %v230_v23 = vld [vmem:[%s209_s23 + $0x38] sm:$0xff]  ;;  %v256_v26 = vadd.f32 %v373_v2, %v241_v15  ;;  %v266_v28 = vld [vmem:[%s438_s26 + $0x28] sm:$0xff]  ;;  %v244_v31 = vmul.f32 %v372_v0, %v229_v22  ;;  %v267_v37 = vld [vmem:[%s438_s26 + $0x30] sm:$0xff] }
  0x13   : > { %v269_v24 = vadd.f32 %v261_v5, %v253_v12  ;;  %v270_v25 = vadd.f32 %v262_v8, %v254_v13  ;;  %v257_v27 = vadd.f32 %v373_v2, %v242_v17  ;;  %v271_v29 = vadd.f32 %v263_v14, %v255_v19  ;;  %v268_v38 = vld [vmem:[%s438_s26 + $0x38] sm:$0xff] }
  0x14   : > { %v258_v30 = vadd.f32 %v373_v2, %v243_v21  ;;  %v245_v32 = vmul.f32 %v372_v0, %v230_v23  ;;  %v272_v35 = vadd.f32 %v264_v16, %v256_v26  ;;  %v259_v41 = vadd.f32 %v373_v2, %v244_v31 }
  0x15   : > { %v277_v33 = vmax.f32 %v269_v24, 0.0  ;;  %v278_v34 = vmax.f32 %v270_v25, 0.0  ;;  %v273_v36 = vadd.f32 %v265_v20, %v257_v27  ;;  %v279_v39 = vmax.f32 %v271_v29, 0.0 }
  0x16   : > { %v274_v40 = vadd.f32 %v266_v28, %v258_v30  ;;  %v260_v42 = vadd.f32 %v373_v2, %v245_v32  ;;  %v280_v43 = vmax.f32 %v272_v35, 0.0  ;;  %v275_v46 = vadd.f32 %v267_v37, %v259_v41 }
  0x17   : > { %285 = vst [vmem:[%s221_s5] sm:$0xff] %v277_v33  ;;  %286 = vst [vmem:[%s221_s5 + $0x8] sm:$0xff] %v278_v34  ;;  %v281_v44 = vmax.f32 %v273_v36, 0.0 }
  0x18   : > { %287 = vst [vmem:[%s221_s5 + $0x10] sm:$0xff] %v279_v39  ;;  %v282_v45 = vmax.f32 %v274_v40, 0.0  ;;  %v276_v47 = vadd.f32 %v268_v38, %v260_v42  ;;  %288 = vst [vmem:[%s221_s5 + $0x18] sm:$0xff] %v280_v43  ;;  %v283_v48 = vmax.f32 %v275_v46, 0.0 }
  0x19   : > { %289 = vst [vmem:[%s221_s5 + $0x20] sm:$0xff] %v281_v44 }
  0x1a   : > { %290 = vst [vmem:[%s221_s5 + $0x28] sm:$0xff] %v282_v45  ;;  %v284_v49 = vmax.f32 %v276_v47, 0.0  ;;  %291 = vst [vmem:[%s221_s5 + $0x30] sm:$0xff] %v283_v48 }
  0x1c   : > { %292 = vst [vmem:[%s221_s5 + $0x38] sm:$0xff] %v284_v49 }
  0x1d PF: > { %s14_s15 = sadd.s32 1, %s390_s15  }
  0x1e   : > { %p11_p4 = scmp.ge.s32.totalorder %s14_s15, 4  }
  0x20   :  { %13 = sbr.rel (!%p11_p4) target bundleno = 1 (0x1), region = 69 }

</bundles_post_ra>
